<compile_context>
chip_gen: v7x
topology: tpu7x:2x2x1
jax: 0.10.0
libtpu: 0.0.40
codegen_flags: <defaults>
</compile_context>

<pallas_src>
import functools

import jax
import jax.numpy as jnp
from jax.experimental import pallas as pl
from jax.experimental.pallas import tpu as pltpu


def _round_up(x, m):
    return (x + m - 1) // m * m


def _edit_decoder_kernel(tok0_ref, labels_ref, emb_ref, repr_bias_ref,
                         wih_ref, whh_ref, enc_ref, encp_ref, mask_ref,
                         wch_ref, bcomp_ref, wout_ref, bout_ref,
                         preds_ref, nll_ref):
    Tm1, B, _ = labels_ref.shape
    H = whh_ref.shape[0]
    Vp = wout_ref.shape[1]

    # ---- loop-invariant vector constants, hoisted once (not re-built per step) ----
    iota_v = jax.lax.broadcasted_iota(jnp.int32, (B, Vp), 1)      # (B, Vp)
    repr_bias = repr_bias_ref[...]                                # (B, 4H) f32 (hoisted gate part)
    mask = mask_ref[...]                                          # (B, 1, S) f32
    b_comp = bcomp_ref[...]                                       # (1, H) f32
    b_out = bout_ref[...]                                         # (1, Vp) f32, pad cols = -1e30

    def step(t, carry):
        h, c, tok = carry                                         # (B,H) f32, (B,H) f32, (B,1) i32

        # --- embedding lookup: one-hot @ table on the MXU (vocab is tiny and
        # VMEM-resident here; at production vocab use a row gather / tiling). ---
        one_hot = (iota_v == tok).astype(jnp.bfloat16)            # (B, Vp)
        emb = jnp.dot(one_hot, emb_ref[...],
                      preferred_element_type=jnp.float32)         # (B, E)

        # --- LSTM cell.  repr @ W_ih_repr + b_ih + b_hh arrives pre-computed
        # as repr_bias (B, 4H).  Gate order: i, f, g, o. ---
        gates = (jnp.dot(emb.astype(jnp.bfloat16), wih_ref[...],
                         preferred_element_type=jnp.float32)
                 + jnp.dot(h.astype(jnp.bfloat16), whh_ref[...],
                           preferred_element_type=jnp.float32)
                 + repr_bias)                                     # (B, 4H)
        i_g = jax.nn.sigmoid(gates[:, 0:H])
        f_g = jax.nn.sigmoid(gates[:, H:2 * H])
        g_g = jnp.tanh(gates[:, 2 * H:3 * H])
        o_g = jax.nn.sigmoid(gates[:, 3 * H:4 * H])
        c_new = f_g * c + i_g * g_g
        h_new = o_g * jnp.tanh(c_new)                             # (B, H) == s_i

        # --- masked dot-product attention as batched MXU einsums (q = 1). ---
        h3 = h_new.astype(jnp.bfloat16)[:, None, :]               # (B, 1, H)
        scores = jnp.einsum('bqh,bsh->bqs', h3, enc_ref[...],
                            preferred_element_type=jnp.float32)   # (B, 1, S)
        scores = jnp.where(mask > 0, scores, jnp.float32(-1e30))
        m = jnp.max(scores, axis=-1, keepdims=True)
        e = jnp.exp(scores - m) * mask                            # masked -> exactly 0
        denom = jnp.maximum(jnp.sum(e, axis=-1, keepdims=True), jnp.float32(1e-30))
        attn = e * pl.reciprocal(denom, approx=True)              # (B, 1, S)
        # t_i @ W_comp_att is folded into enc_proj = enc @ W_comp_att (hoisted),
        # so the attention output directly yields the composer contribution.
        att_c = jnp.einsum('bqs,bsh->bqh', attn.astype(jnp.bfloat16), encp_ref[...],
                           preferred_element_type=jnp.float32)[:, 0, :]   # (B, H)

        # --- composer + output projection (concats removed by weight splitting). ---
        new_s = (jnp.dot(h_new.astype(jnp.bfloat16), wch_ref[...],
                         preferred_element_type=jnp.float32)
                 + att_c + b_comp)                                # (B, H)
        logits = (jnp.dot(new_s.astype(jnp.bfloat16), wout_ref[...],
                          preferred_element_type=jnp.float32)
                  + b_out)                                        # (B, Vp); pad cols ~ -1e30

        # --- greedy argmax (first max) + per-step NLL, all in-kernel. ---
        mx = jnp.max(logits, axis=-1, keepdims=True)              # (B, 1)
        pred = jnp.min(jnp.where(logits >= mx, iota_v, Vp),
                       axis=-1, keepdims=True).astype(jnp.int32)  # (B, 1)
        lse = mx + jnp.log(jnp.sum(jnp.exp(logits - mx), axis=-1, keepdims=True))
        label = labels_ref[pl.ds(t, 1)][0]                        # (B, 1) int32
        label_logit = jnp.sum(jnp.where(iota_v == label, logits, 0.0),
                              axis=-1, keepdims=True)             # (B, 1)
        nll = lse - label_logit                                   # (B, 1)

        # O(1) per-step stores: time-major outputs, dynamic leading-dim index.
        preds_ref[pl.ds(t, 1)] = pred[None]
        nll_ref[pl.ds(t, 1)] = nll[None]

        # Greedy feedback (eval: no teacher forcing) + recurrent state carry.
        return h_new, c_new, pred

    h0 = jnp.zeros((B, H), jnp.float32)
    c0 = jnp.zeros((B, H), jnp.float32)
    jax.lax.fori_loop(0, Tm1, step, (h0, c0, tok0_ref[...]))


def edit_decoder_forward(params, representation, encoder_hidden_states, seq,
                         src_batch_mask, pad_idx=0):
    """Eval-mode EditDecoder.forward. Returns (loss, predictions, ppl)."""
    B, T = seq.shape
    Tm1 = T - 1
    V, E = params["embedding"].shape
    H = params["w_hh"].shape[1]
    R = representation.shape[1]
    S = encoder_hidden_states.shape[1]
    assert representation.shape == (B, R)
    assert params["w_ih"].shape == (4 * H, E + R)
    Vp = _round_up(V, 128)

    f32, bf16 = jnp.float32, jnp.bfloat16

    # ---- one-time glue (outside the decode recurrence) ----
    wih_t = params["w_ih"].T.astype(f32)                   # (E+R, 4H)
    w_ih_emb = wih_t[:E].astype(bf16)                      # (E, 4H)
    w_ih_repr = wih_t[E:]                                  # (R, 4H) f32
    bias = (params["b_ih"] + params["b_hh"]).astype(f32)   # (4H,)
    # time-invariant partial gate pre-activation, hoisted out of the time loop
    repr_bias = representation.astype(f32) @ w_ih_repr + bias[None, :]   # (B, 4H)
    w_hh = params["w_hh"].T.astype(bf16)                   # (H, 4H)
    wcomp_t = params["w_comp"].T.astype(f32)               # (2H, H)
    w_comp_h = wcomp_t[:H].astype(bf16)                    # (H, H)
    w_comp_att = wcomp_t[H:]                               # (H, H) f32
    b_comp = params["b_comp"].astype(f32)[None, :]         # (1, H)
    # vocab padded to a 128-lane multiple; padded logits pinned to -1e30
    w_out = jnp.zeros((H, Vp), f32).at[:, :V].set(params["w_out"].T).astype(bf16)
    b_out = jnp.full((Vp,), -1e30, f32).at[:V].set(params["b_out"].astype(f32))[None, :]
    emb_tbl = jnp.zeros((Vp, E), f32).at[:V, :].set(params["embedding"]).astype(bf16)

    enc_f32 = encoder_hidden_states.astype(f32)
    enc = enc_f32.astype(bf16)                             # (B, S, H)
    # hoist the attention-side composer weight: (attn @ enc) @ W == attn @ (enc @ W)
    enc_proj = jnp.einsum('bsh,hk->bsk', enc_f32, w_comp_att).astype(bf16)   # (B, S, H)
    mask3 = src_batch_mask.astype(f32)[:, None, :]         # (B, 1, S)
    tok0 = seq[:, 0:1].astype(jnp.int32)                   # (B, 1)
    labels = seq[:, 1:].astype(jnp.int32)                  # (B, Tm1)
    labels_tm = jnp.transpose(labels)[:, :, None]          # (Tm1, B, 1) time-major

    preds_tm, nll_tm = pl.pallas_call(
        _edit_decoder_kernel,
        out_shape=(jax.ShapeDtypeStruct((Tm1, B, 1), jnp.int32),
                   jax.ShapeDtypeStruct((Tm1, B, 1), jnp.float32)),
        compiler_params=pltpu.CompilerParams(
            vmem_limit_bytes=64 * 1024 * 1024),
    )(tok0, labels_tm, emb_tbl, repr_bias, w_ih_emb, w_hh, enc, enc_proj,
      mask3, w_comp_h, b_comp, w_out, b_out)

    preds = jnp.transpose(preds_tm[:, :, 0])               # (B, Tm1)
    nll = jnp.transpose(nll_tm[:, :, 0])                   # (B, Tm1)

    # TODO(synk): training-only branches (Bernoulli word dropout, random teacher
    # forcing, nn.Dropout) are RNG/training-mode driven and not reproduced here.
    valid = (labels != pad_idx).astype(jnp.float32)
    loss = jnp.sum(nll * valid)                            # CrossEntropyLoss(size_average=False)
    ppl = jnp.exp(loss / jnp.maximum(jnp.sum(valid), 1.0)) # exp(mean CE over non-pad)
    return loss, preds, ppl


if __name__ == "__main__":
    key = jax.random.PRNGKey(0)
    B, T, S = 8, 8, 16            # batch, target seq_len, source seq_len
    V, E, R, H = 64, 16, 16, 32   # vocab, embedding_dim, repr_hidden_size, hidden
    PAD = 0

    ks = jax.random.split(key, 14)
    params = {
        "embedding": 0.1 * jax.random.normal(ks[0], (V, E), jnp.float32),
        "w_ih": 0.1 * jax.random.normal(ks[1], (4 * H, E + R), jnp.float32),
        "w_hh": 0.1 * jax.random.normal(ks[2], (4 * H, H), jnp.float32),
        "b_ih": 0.1 * jax.random.normal(ks[3], (4 * H,), jnp.float32),
        "b_hh": 0.1 * jax.random.normal(ks[4], (4 * H,), jnp.float32),
        "w_comp": 0.1 * jax.random.normal(ks[5], (H, 2 * H), jnp.float32),
        "b_comp": 0.1 * jax.random.normal(ks[6], (H,), jnp.float32),
        "w_out": 0.1 * jax.random.normal(ks[7], (V, H), jnp.float32),
        "b_out": 0.1 * jax.random.normal(ks[8], (V,), jnp.float32),
    }
    # nn.Embedding(padding_idx=0): padding row is zero
    params["embedding"] = params["embedding"].at[PAD].set(0.0)

    representation = jax.random.normal(ks[9], (B, R), jnp.float32)
    encoder_hidden_states = jax.random.normal(ks[10], (B, S, H), jnp.float32)
    seq = jax.random.randint(ks[11], (B, T), 0, V, dtype=jnp.int32)
    src_batch_mask = (jax.random.uniform(ks[12], (B, S)) > 0.2).astype(jnp.float32)
    src_batch_mask = src_batch_mask.at[:, 0].set(1.0)   # at least one valid position

    fwd = jax.jit(functools.partial(edit_decoder_forward, pad_idx=PAD))
    loss, predictions, ppl = fwd(params, representation, encoder_hidden_states,
                                 seq, src_batch_mask)
    jax.block_until_ready((loss, predictions, ppl))
    assert predictions.shape == (B, T - 1)
    assert bool(jnp.isfinite(loss)) and bool(jnp.isfinite(ppl))
    print("KERNEL_OK")
</pallas_src>

<mosaic_0001>
module attributes {stable_mosaic.version = 11 : i64} {
  func.func @_edit_decoder_kernel(%arg0: memref<8x1xi32, #tpu.memory_space<vmem>>, %arg1: memref<7x8x1xi32, #tpu.memory_space<vmem>>, %arg2: memref<128x16xbf16, #tpu.memory_space<vmem>>, %arg3: memref<8x128xf32, #tpu.memory_space<vmem>>, %arg4: memref<16x128xbf16, #tpu.memory_space<vmem>>, %arg5: memref<32x128xbf16, #tpu.memory_space<vmem>>, %arg6: memref<8x16x32xbf16, #tpu.memory_space<vmem>>, %arg7: memref<8x16x32xbf16, #tpu.memory_space<vmem>>, %arg8: memref<8x1x16xf32, #tpu.memory_space<vmem>>, %arg9: memref<32x32xbf16, #tpu.memory_space<vmem>>, %arg10: memref<1x32xf32, #tpu.memory_space<vmem>>, %arg11: memref<32x128xbf16, #tpu.memory_space<vmem>>, %arg12: memref<1x128xf32, #tpu.memory_space<vmem>>, %arg13: memref<7x8x1xi32, #tpu.memory_space<vmem>>, %arg14: memref<7x8x1xf32, #tpu.memory_space<vmem>>) attributes {dimension_semantics = [], scalar_prefetch = 0 : i64, scratch_operands = 0 : i64, tpu.core_type = #tpu.core_type<tc>} {
    %0 = tpu.iota {dimensions = array<i32: 1>} : vector<8x128xi32>
    %c0 = arith.constant 0 : index
    %c0_0 = arith.constant 0 : index
    %1 = vector.load %arg3[%c0, %c0_0] : memref<8x128xf32, #tpu.memory_space<vmem>>, vector<8x128xf32>
    %c0_1 = arith.constant 0 : index
    %c0_2 = arith.constant 0 : index
    %c0_3 = arith.constant 0 : index
    %2 = vector.load %arg8[%c0_1, %c0_2, %c0_3] : memref<8x1x16xf32, #tpu.memory_space<vmem>>, vector<8x1x16xf32>
    %c0_4 = arith.constant 0 : index
    %c0_5 = arith.constant 0 : index
    %3 = vector.load %arg10[%c0_4, %c0_5] : memref<1x32xf32, #tpu.memory_space<vmem>>, vector<1x32xf32>
    %c0_6 = arith.constant 0 : index
    %c0_7 = arith.constant 0 : index
    %4 = vector.load %arg12[%c0_6, %c0_7] : memref<1x128xf32, #tpu.memory_space<vmem>>, vector<1x128xf32>
    %cst = arith.constant 0.000000e+00 : f32
    %5 = vector.broadcast %cst : f32 to vector<8x32xf32>
    %cst_8 = arith.constant 0.000000e+00 : f32
    %6 = vector.broadcast %cst_8 : f32 to vector<8x32xf32>
    %c0_9 = arith.constant 0 : index
    %c0_10 = arith.constant 0 : index
    %7 = vector.load %arg0[%c0_9, %c0_10] : memref<8x1xi32, #tpu.memory_space<vmem>>, vector<8x1xi32>
    %c0_i32 = arith.constant 0 : i32
    %c7_i32 = arith.constant 7 : i32
    %8 = arith.addi %c0_i32, %c7_i32 : i32
    %c1_i32 = arith.constant 1 : i32
    %9:3 = scf.for %arg15 = %c0_i32 to %8 step %c1_i32 iter_args(%arg16 = %5, %arg17 = %6, %arg18 = %7) -> (vector<8x32xf32>, vector<8x32xf32>, vector<8x1xi32>)  : i32 {
      %10 = vector.broadcast %arg18 : vector<8x1xi32> to vector<8x128xi32>
      %11 = arith.cmpi eq, %0, %10 : vector<8x128xi32>
      %12 = arith.extui %11 : vector<8x128xi1> to vector<8x128xi32>
      %13 = arith.sitofp %12 : vector<8x128xi32> to vector<8x128xf32>
      %14 = arith.truncf %13 : vector<8x128xf32> to vector<8x128xbf16>
      %c0_12 = arith.constant 0 : index
      %c0_13 = arith.constant 0 : index
      %15 = vector.load %arg2[%c0_12, %c0_13] : memref<128x16xbf16, #tpu.memory_space<vmem>>, vector<128x16xbf16>
      %cst_14 = arith.constant dense<0.000000e+00> : vector<8x16xf32>
      %16 = tpu.matmul %14, %15, %cst_14 {dimension_numbers = #tpu.dot_dimension_numbers<[1], [0], [0], [1], [0, 0, 1, 1], [], []>} : vector<8x128xbf16>, vector<128x16xbf16>, vector<8x16xf32> -> vector<8x16xf32>
      %17 = arith.truncf %16 : vector<8x16xf32> to vector<8x16xbf16>
      %c0_15 = arith.constant 0 : index
      %c0_16 = arith.constant 0 : index
      %18 = vector.load %arg4[%c0_15, %c0_16] : memref<16x128xbf16, #tpu.memory_space<vmem>>, vector<16x128xbf16>
      %cst_17 = arith.constant dense<0.000000e+00> : vector<8x128xf32>
      %19 = tpu.matmul %17, %18, %cst_17 {dimension_numbers = #tpu.dot_dimension_numbers<[1], [0], [0], [1], [0, 0, 1, 1], [], []>} : vector<8x16xbf16>, vector<16x128xbf16>, vector<8x128xf32> -> vector<8x128xf32>
      %20 = arith.truncf %arg16 : vector<8x32xf32> to vector<8x32xbf16>
      %c0_18 = arith.constant 0 : index
      %c0_19 = arith.constant 0 : index
      %21 = vector.load %arg5[%c0_18, %c0_19] : memref<32x128xbf16, #tpu.memory_space<vmem>>, vector<32x128xbf16>
      %cst_20 = arith.constant dense<0.000000e+00> : vector<8x128xf32>
      %22 = tpu.matmul %20, %21, %cst_20 {dimension_numbers = #tpu.dot_dimension_numbers<[1], [0], [0], [1], [0, 0, 1, 1], [], []>} : vector<8x32xbf16>, vector<32x128xbf16>, vector<8x128xf32> -> vector<8x128xf32>
      %23 = arith.addf %19, %22 : vector<8x128xf32>
      %24 = arith.addf %23, %1 : vector<8x128xf32>
      %25 = vector.extract_strided_slice %24 {offsets = [0, 0], sizes = [8, 32], strides = [1, 1]} : vector<8x128xf32> to vector<8x32xf32>
      %26 = arith.negf %25 : vector<8x32xf32>
      %27 = math.exp %26 : vector<8x32xf32>
      %cst_21 = arith.constant 1.000000e+00 : f32
      %28 = vector.broadcast %cst_21 : f32 to vector<8x32xf32>
      %29 = arith.addf %28, %27 : vector<8x32xf32>
      %30 = arith.divf %28, %29 : vector<8x32xf32>
      %31 = vector.extract_strided_slice %24 {offsets = [0, 32], sizes = [8, 32], strides = [1, 1]} : vector<8x128xf32> to vector<8x32xf32>
      %32 = arith.negf %31 : vector<8x32xf32>
      %33 = math.exp %32 : vector<8x32xf32>
      %cst_22 = arith.constant 1.000000e+00 : f32
      %34 = vector.broadcast %cst_22 : f32 to vector<8x32xf32>
      %35 = arith.addf %34, %33 : vector<8x32xf32>
      %36 = arith.divf %34, %35 : vector<8x32xf32>
      %37 = vector.extract_strided_slice %24 {offsets = [0, 64], sizes = [8, 32], strides = [1, 1]} : vector<8x128xf32> to vector<8x32xf32>
      %38 = math.tanh %37 : vector<8x32xf32>
      %39 = vector.extract_strided_slice %24 {offsets = [0, 96], sizes = [8, 32], strides = [1, 1]} : vector<8x128xf32> to vector<8x32xf32>
      %40 = arith.negf %39 : vector<8x32xf32>
      %41 = math.exp %40 : vector<8x32xf32>
      %cst_23 = arith.constant 1.000000e+00 : f32
      %42 = vector.broadcast %cst_23 : f32 to vector<8x32xf32>
      %43 = arith.addf %42, %41 : vector<8x32xf32>
      %44 = arith.divf %42, %43 : vector<8x32xf32>
      %45 = arith.mulf %36, %arg17 : vector<8x32xf32>
      %46 = arith.mulf %30, %38 : vector<8x32xf32>
      %47 = arith.addf %45, %46 : vector<8x32xf32>
      %48 = math.tanh %47 : vector<8x32xf32>
      %49 = arith.mulf %44, %48 : vector<8x32xf32>
      %50 = arith.truncf %49 : vector<8x32xf32> to vector<8x32xbf16>
      %51 = vector.shape_cast %50 : vector<8x32xbf16> to vector<8x1x32xbf16>
      %c0_24 = arith.constant 0 : index
      %c0_25 = arith.constant 0 : index
      %c0_26 = arith.constant 0 : index
      %52 = vector.load %arg6[%c0_24, %c0_25, %c0_26] : memref<8x16x32xbf16, #tpu.memory_space<vmem>>, vector<8x16x32xbf16>
      "tpu.trace_start"() <{level = 10 : i32, message = "bqh,bsh->bqs"}> : () -> ()
      %cst_27 = arith.constant dense<0.000000e+00> : vector<8x1x16xf32>
      %53 = tpu.matmul %51, %52, %cst_27 {dimension_numbers = #tpu.dot_dimension_numbers<[2], [2], [1], [1], [0, 0, 0, 1, 1, 1], [0], [0]>} : vector<8x1x32xbf16>, vector<8x16x32xbf16>, vector<8x1x16xf32> -> vector<8x1x16xf32>
      %cst_28 = arith.constant 0.000000e+00 : f32
      "tpu.trace_stop"() : () -> ()
      %54 = vector.broadcast %cst_28 : f32 to vector<8x1x16xf32>
      %55 = arith.cmpf ogt, %2, %54 : vector<8x1x16xf32>
      %cst_29 = arith.constant -1.000000e+30 : f32
      %56 = vector.broadcast %cst_29 : f32 to vector<8x1x16xf32>
      %57 = arith.select %55, %53, %56 : vector<8x1x16xi1>, vector<8x1x16xf32>
      %cst_30 = arith.constant dense<0xFF800000> : vector<8x1xf32>
      %58 = vector.multi_reduction <maximumf>, %57, %cst_30 [2] : vector<8x1x16xf32> to vector<8x1xf32>
      %59 = vector.shape_cast %58 : vector<8x1xf32> to vector<8x1x1xf32>
      %60 = vector.broadcast %59 : vector<8x1x1xf32> to vector<8x1x16xf32>
      %61 = arith.subf %57, %60 : vector<8x1x16xf32>
      %62 = math.exp %61 : vector<8x1x16xf32>
      %63 = arith.mulf %62, %2 : vector<8x1x16xf32>
      %cst_31 = arith.constant dense<0.000000e+00> : vector<8x1xf32>
      %64 = vector.multi_reduction <add>, %63, %cst_31 [2] : vector<8x1x16xf32> to vector<8x1xf32>
      %65 = vector.shape_cast %64 : vector<8x1xf32> to vector<8x1x1xf32>
      %cst_32 = arith.constant 1.000000e-30 : f32
      %66 = vector.broadcast %cst_32 : f32 to vector<8x1x1xf32>
      %67 = arith.maximumf %65, %66 : vector<8x1x1xf32>
      %68 = tpu.reciprocal %67 {approx = true} : vector<8x1x1xf32> -> vector<8x1x1xf32>
      %69 = vector.broadcast %68 : vector<8x1x1xf32> to vector<8x1x16xf32>
      %70 = arith.mulf %63, %69 : vector<8x1x16xf32>
      %71 = arith.truncf %70 : vector<8x1x16xf32> to vector<8x1x16xbf16>
      %c0_33 = arith.constant 0 : index
      %c0_34 = arith.constant 0 : index
      %c0_35 = arith.constant 0 : index
      %72 = vector.load %arg7[%c0_33, %c0_34, %c0_35] : memref<8x16x32xbf16, #tpu.memory_space<vmem>>, vector<8x16x32xbf16>
      "tpu.trace_start"() <{level = 10 : i32, message = "bqs,bsh->bqh"}> : () -> ()
      %cst_36 = arith.constant dense<0.000000e+00> : vector<8x1x32xf32>
      %73 = tpu.matmul %71, %72, %cst_36 {dimension_numbers = #tpu.dot_dimension_numbers<[2], [1], [1], [2], [0, 0, 0, 1, 1, 2], [0], [0]>} : vector<8x1x16xbf16>, vector<8x16x32xbf16>, vector<8x1x32xf32> -> vector<8x1x32xf32>
      "tpu.trace_stop"() : () -> ()
      %74 = vector.shape_cast %73 : vector<8x1x32xf32> to vector<8x32xf32>
      %75 = arith.truncf %49 : vector<8x32xf32> to vector<8x32xbf16>
      %c0_37 = arith.constant 0 : index
      %c0_38 = arith.constant 0 : index
      %76 = vector.load %arg9[%c0_37, %c0_38] : memref<32x32xbf16, #tpu.memory_space<vmem>>, vector<32x32xbf16>
      %cst_39 = arith.constant dense<0.000000e+00> : vector<8x32xf32>
      %77 = tpu.matmul %75, %76, %cst_39 {dimension_numbers = #tpu.dot_dimension_numbers<[1], [0], [0], [1], [0, 0, 1, 1], [], []>} : vector<8x32xbf16>, vector<32x32xbf16>, vector<8x32xf32> -> vector<8x32xf32>
      %78 = arith.addf %77, %74 : vector<8x32xf32>
      %79 = vector.broadcast %3 : vector<1x32xf32> to vector<8x32xf32>
      %80 = arith.addf %78, %79 : vector<8x32xf32>
      %81 = arith.truncf %80 : vector<8x32xf32> to vector<8x32xbf16>
      %c0_40 = arith.constant 0 : index
      %c0_41 = arith.constant 0 : index
      %82 = vector.load %arg11[%c0_40, %c0_41] : memref<32x128xbf16, #tpu.memory_space<vmem>>, vector<32x128xbf16>
      %cst_42 = arith.constant dense<0.000000e+00> : vector<8x128xf32>
      %83 = tpu.matmul %81, %82, %cst_42 {dimension_numbers = #tpu.dot_dimension_numbers<[1], [0], [0], [1], [0, 0, 1, 1], [], []>} : vector<8x32xbf16>, vector<32x128xbf16>, vector<8x128xf32> -> vector<8x128xf32>
      %84 = vector.broadcast %4 : vector<1x128xf32> to vector<8x128xf32>
      %85 = arith.addf %83, %84 : vector<8x128xf32>
      %cst_43 = arith.constant dense<0xFF800000> : vector<8xf32>
      %86 = vector.multi_reduction <maximumf>, %85, %cst_43 [1] : vector<8x128xf32> to vector<8xf32>
      %87 = vector.shape_cast %86 : vector<8xf32> to vector<8x1xf32>
      %88 = vector.broadcast %87 : vector<8x1xf32> to vector<8x128xf32>
      %89 = arith.cmpf oge, %85, %88 : vector<8x128xf32>
      %c128_i32 = arith.constant 128 : i32
      %90 = vector.broadcast %c128_i32 : i32 to vector<8x128xi32>
      %91 = arith.select %89, %0, %90 : vector<8x128xi1>, vector<8x128xi32>
      %cst_44 = arith.constant dense<2147483647> : vector<8xi32>
      %92 = vector.multi_reduction <minsi>, %91, %cst_44 [1] : vector<8x128xi32> to vector<8xi32>
      %93 = vector.shape_cast %92 : vector<8xi32> to vector<8x1xi32>
      %94 = vector.broadcast %87 : vector<8x1xf32> to vector<8x128xf32>
      %95 = arith.subf %85, %94 : vector<8x128xf32>
      %96 = math.exp %95 : vector<8x128xf32>
      %cst_45 = arith.constant dense<0.000000e+00> : vector<8xf32>
      %97 = vector.multi_reduction <add>, %96, %cst_45 [1] : vector<8x128xf32> to vector<8xf32>
      %98 = vector.shape_cast %97 : vector<8xf32> to vector<8x1xf32>
      %99 = math.log %98 : vector<8x1xf32>
      %100 = arith.addf %87, %99 : vector<8x1xf32>
      %101 = arith.index_cast %arg15 : i32 to index
      %c0_46 = arith.constant 0 : index
      %c0_47 = arith.constant 0 : index
      %102 = vector.load %arg1[%101, %c0_46, %c0_47] : memref<7x8x1xi32, #tpu.memory_space<vmem>>, vector<1x8x1xi32>
      %103 = vector.shape_cast %102 : vector<1x8x1xi32> to vector<8x1xi32>
      %104 = vector.broadcast %103 : vector<8x1xi32> to vector<8x128xi32>
      %105 = arith.cmpi eq, %0, %104 : vector<8x128xi32>
      %cst_48 = arith.constant 0.000000e+00 : f32
      %106 = vector.broadcast %cst_48 : f32 to vector<8x128xf32>
      %107 = arith.select %105, %85, %106 : vector<8x128xi1>, vector<8x128xf32>
      %cst_49 = arith.constant dense<0.000000e+00> : vector<8xf32>
      %108 = vector.multi_reduction <add>, %107, %cst_49 [1] : vector<8x128xf32> to vector<8xf32>
      %109 = vector.shape_cast %108 : vector<8xf32> to vector<8x1xf32>
      %110 = arith.subf %100, %109 : vector<8x1xf32>
      %111 = vector.shape_cast %93 : vector<8x1xi32> to vector<1x8x1xi32>
      %112 = arith.index_cast %arg15 : i32 to index
      %c0_50 = arith.constant 0 : index
      %c0_51 = arith.constant 0 : index
      %113 = vector.load %arg13[%112, %c0_50, %c0_51] : memref<7x8x1xi32, #tpu.memory_space<vmem>>, vector<1x8x1xi32>
      tpu.vector_store %arg13[%112, %c0_50, %c0_51], %111 {strides = array<i32>} : memref<7x8x1xi32, #tpu.memory_space<vmem>>, vector<1x8x1xi32>,
      %114 = vector.shape_cast %110 : vector<8x1xf32> to vector<1x8x1xf32>
      %115 = arith.index_cast %arg15 : i32 to index
      %c0_52 = arith.constant 0 : index
      %c0_53 = arith.constant 0 : index
      %116 = vector.load %arg14[%115, %c0_52, %c0_53] : memref<7x8x1xf32, #tpu.memory_space<vmem>>, vector<1x8x1xf32>
      tpu.vector_store %arg14[%115, %c0_52, %c0_53], %114 {strides = array<i32>} : memref<7x8x1xf32, #tpu.memory_space<vmem>>, vector<1x8x1xf32>,
      scf.yield %49, %47, %93 : vector<8x32xf32>, vector<8x32xf32>, vector<8x1xi32>
    }
    %c7_i32_11 = arith.constant 7 : i32
    return
  }
}

</mosaic_0001>

<bundles_post_ra>
// kernel: edit_decoder_forward.1
= control target key start
LH: loop header
LB: loop body
LE: loop exit
PB: predicated region body
PF: predicated region fallthrough
CT: control target
= control target key end

     0   :  { %20 = vsyncpa [#allocation3], 0  ;;  %s3191_s0 = inlined_call_operand.hbm [shape: s32[8,1], index: 0, kind: input, shape index: {}]   ;;  %s3192_s1 = inlined_call_operand.hbm [shape: s32[7,8,1], index: 1, kind: input, shape index: {}]   ;;  %s3193_s2 = inlined_call_operand.hbm [shape: bf16[128,16], index: 2, kind: input, shape index: {}]   ;;  %s3194_s3 = inlined_call_operand.hbm [shape: f32[8,128], index: 3, kind: input, shape index: {}]   ;;  %s3195_s4 = inlined_call_operand.hbm [shape: bf16[16,128], index: 4, kind: input, shape index: {}]   ;;  %s3196_s5 = inlined_call_operand.hbm [shape: bf16[32,128], index: 5, kind: input, shape index: {}]   ;;  %s3197_s6 = inlined_call_operand.hbm [shape: bf16[8,16,32], index: 6, kind: input, shape index: {}]   ;;  %s3198_s7 = inlined_call_operand.hbm [shape: bf16[8,16,32], index: 7, kind: input, shape index: {}]   ;;  %s3199_s8 = inlined_call_operand.hbm [shape: f32[8,1,16], index: 8, kind: input, shape index: {}]   ;;  %s3200_s9 = inlined_call_operand.hbm [shape: bf16[32,32], index: 9, kind: input, shape index: {}]   ;;  %s3201_s10 = inlined_call_operand.hbm [shape: f32[1,32], index: 10, kind: input, shape index: {}]   ;;  %s3202_s11 = inlined_call_operand.hbm [shape: bf16[32,128], index: 11, kind: input, shape index: {}]   ;;  %s3203_s12 = inlined_call_operand.hbm [shape: f32[1,128], index: 12, kind: input, shape index: {}]   ;;  %s3204_s13 = inlined_call_operand.hbm [shape: s32[7,8,1], index: 13, kind: output, shape index: {0}]   ;;  %s3205_s14 = inlined_call_operand.hbm [shape: f32[7,8,1], index: 14, kind: output, shape index: {1}]  }
   0x1   :  { %21 = vsyncpa [#allocation6], 0 }
   0x2   :  { %22 = vsyncpa [#allocation9], 0 }
   0x3   :  { %23 = vsyncpa [#allocation12], 0 }
   0x4   :  { %24 = vsyncpa [#allocation15], 0 }
   0x5   :  { %25 = vsyncpa [#allocation18], 0 }
   0x6   :  { %26 = vsyncpa [#allocation21], 0 }
   0x7   :  { %27 = vsyncpa [#allocation4], 0 }
   0x8   :  { %28 = vsyncpa [#allocation25], 0  ;;  %s2586_s29 = smov [#allocation5]   ;;  %s2206_s17 = scalar_lea.hbm %s3192_s1, 896 }
   0x9   :  { %s44_s30 = sshll.u32 %s2586_s29, 4  ;;  %p2207_p0 = scmp.ne.s32.totalorder %s3192_s1, %s2206_s17  ;;  %s45_s30 = int_to_ptr.vmem [resolvable:$true] %s44_s30 }
   0xa   :  { %p2210_p1 = scmp.lt.u32.totalorder %s2206_s17, %s3192_s1 }
   0xc   :  { %p2212_p2 = pnand %p2210_p1, %p2207_p0 }
   0xe   :  { %2215 = shalt.err (!%p2212_p2)
}
   0xf   :  { %s2216_s22 = scalar_lea.vmem %s45_s30, 896  ;;  %p2221_p4 = scmp.lt.s32.totalorder %s45_s30, %s45_s30 }
  0x10   :  { %p2217_p3 = scmp.ne.s32.totalorder %s45_s30, %s2216_s22  ;;  %p2222_p5 = scmp.lt.s32.totalorder %s2216_s22, %s2216_s22 }
  0x12   :  { %p2223_p6 = por %p2222_p5, %p2221_p4 }
  0x14   :  { %p2224_p7 = pnand %p2223_p6, %p2217_p3 }
  0x16   :  { %2227 = shalt.err (!%p2224_p7)
}
  0x17   :  { %s2587_s23 = smov 128   ;;  %s2588_s24 = smov 8  }
  0x18   :  { %50 = dma.hbm_to_vmem [thread:$0]  %s3192_s1, 896, %s45_s30, [#allocation6], %s2587_s23, %s2587_s23, %s2588_s24  }
  0x19   :  { %s2589_s27 = smov [#allocation8]   ;;  %s2228_s16 = scalar_lea.hbm %s3194_s3, 128 }
  0x1a   :  { %s69_s28 = sshll.u32 %s2589_s27, 4  ;;  %p2229_p8 = scmp.ne.s32.totalorder %s3194_s3, %s2228_s16  ;;  %s70_s28 = int_to_ptr.vmem [resolvable:$true] %s69_s28 }
  0x1b   :  { %p2232_p9 = scmp.lt.u32.totalorder %s2228_s16, %s3194_s3 }
  0x1d   :  { %p2234_p10 = pnand %p2232_p9, %p2229_p8 }
  0x1f   :  { %2237 = shalt.err (!%p2234_p10)
}
  0x20   :  { %s2238_s21 = scalar_lea.vmem %s70_s28, 128  ;;  %p2243_p12 = scmp.lt.s32.totalorder %s70_s28, %s70_s28 }
  0x21   :  { %p2239_p11 = scmp.ne.s32.totalorder %s70_s28, %s2238_s21  ;;  %p2244_p13 = scmp.lt.s32.totalorder %s2238_s21, %s2238_s21 }
  0x23   :  { %p2245_p0 = por %p2244_p13, %p2243_p12 }
  0x25   :  { %p2246_p1 = pnand %p2245_p0, %p2239_p11 }
  0x27   :  { %2249 = shalt.err (!%p2246_p1)
}
  0x28   :  { %72 = dma.hbm_to_vmem [thread:$0]  %s3194_s3, 128, %s70_s28, [#allocation9]  }
  0x29   :  { %s2590_s22 = smov [#allocation11]   ;;  %s2591_s26 = smov [#allocation14]  }
  0x2a   :  { %s90_s25 = sshll.u32 %s2590_s22, 4  ;;  %s114_s27 = sshll.u32 %s2591_s26, 4  ;;  %s91_s25 = int_to_ptr.vmem [resolvable:$true] %s90_s25  ;;  %s2716_s27 = int_to_ptr.vmem [resolvable:$true] %s114_s27 }
  0x2b   :  { %s2250_s16 = scalar_lea.hbm %s3196_s5, 256 }
  0x2c   :  { %p2251_p2 = scmp.ne.s32.totalorder %s3196_s5, %s2250_s16  ;;  %p2254_p3 = scmp.lt.u32.totalorder %s2250_s16, %s3196_s5 }
  0x2e   :  { %p2256_p4 = pnand %p2254_p3, %p2251_p2 }
  0x30   :  { %2259 = shalt.err (!%p2256_p4)
}
  0x31   :  { %s2260_s3 = scalar_lea.vmem %s91_s25, 256  ;;  %p2265_p6 = scmp.lt.s32.totalorder %s91_s25, %s91_s25 }
  0x32   :  { %p2261_p5 = scmp.ne.s32.totalorder %s91_s25, %s2260_s3  ;;  %p2266_p7 = scmp.lt.s32.totalorder %s2260_s3, %s2260_s3 }
  0x34   :  { %p2267_p8 = por %p2266_p7, %p2265_p6 }
  0x36   :  { %p2268_p9 = pnand %p2267_p8, %p2261_p5 }
  0x38   :  { %2271 = shalt.err (!%p2268_p9)
}
  0x39   :  { %s2592_s28 = smov 64   ;;  %s2593_s21 = smov 4  }
  0x3a   :  { %96 = dma.hbm_to_vmem [thread:$0]  %s3196_s5, 256, %s91_s25, [#allocation12], %s2592_s28, %s2592_s28, %s2593_s21  }
  0x3b   :  { %s2272_s29 = scalar_lea.hbm %s3198_s7, 1024 }
  0x3c   :  { %p2273_p10 = scmp.ne.s32.totalorder %s3198_s7, %s2272_s29  ;;  %p2276_p11 = scmp.lt.u32.totalorder %s2272_s29, %s3198_s7 }
  0x3e   :  { %p2278_p12 = pnand %p2276_p11, %p2273_p10 }
  0x40   :  { %2281 = shalt.err (!%p2278_p12)
}
  0x41   :  { %s2282_s19 = scalar_lea.vmem %s2716_s27, 1024  ;;  %p2287_p0 = scmp.lt.s32.totalorder %s2716_s27, %s2716_s27 }
  0x42   :  { %p2283_p13 = scmp.ne.s32.totalorder %s2716_s27, %s2282_s19  ;;  %p2288_p1 = scmp.lt.s32.totalorder %s2282_s19, %s2282_s19 }
  0x44   :  { %p2289_p2 = por %p2288_p1, %p2287_p0 }
  0x46   :  { %p2290_p3 = pnand %p2289_p2, %p2283_p13 }
  0x48   :  { %2293 = shalt.err (!%p2290_p3)
}
  0x49   :  { %120 = dma.hbm_to_vmem [thread:$0]  %s3198_s7, 1024, %s2716_s27, [#allocation15], %s2592_s28, %s2592_s28, %s2593_s21  }
  0x4a   :  { %s2594_s20 = smov [#allocation17]   ;;  %s2595_s1 = smov [#allocation20]  }
  0x4b   :  { %s138_s3 = sshll.u32 %s2594_s20, 4  ;;  %s160_s30 = sshll.u32 %s2595_s1, 4  ;;  %s139_s3 = int_to_ptr.vmem [resolvable:$true] %s138_s3  ;;  %s2753_s30 = int_to_ptr.vmem [resolvable:$true] %s160_s30 }
  0x4c   :  { %s2294_s29 = scalar_lea.hbm %s3200_s9, 256 }
  0x4d   :  { %p2295_p4 = scmp.ne.s32.totalorder %s3200_s9, %s2294_s29  ;;  %p2298_p5 = scmp.lt.u32.totalorder %s2294_s29, %s3200_s9 }
  0x4f   :  { %p2300_p6 = pnand %p2298_p5, %p2295_p4 }
  0x51   :  { %2303 = shalt.err (!%p2300_p6)
}
  0x52   :  { %s2304_s7 = scalar_lea.vmem %s139_s3, 256  ;;  %p2309_p8 = scmp.lt.s32.totalorder %s139_s3, %s139_s3 }
  0x53   :  { %p2305_p7 = scmp.ne.s32.totalorder %s139_s3, %s2304_s7  ;;  %p2310_p9 = scmp.lt.s32.totalorder %s2304_s7, %s2304_s7 }
  0x55   :  { %p2311_p10 = por %p2310_p9, %p2309_p8 }
  0x57   :  { %p2312_p11 = pnand %p2311_p10, %p2305_p7 }
  0x59   :  { %2315 = shalt.err (!%p2312_p11)
}
  0x5a   :  { %144 = dma.hbm_to_vmem [thread:$0]  %s3200_s9, 256, %s139_s3, [#allocation18], %s2592_s28, %s2592_s28, %s2593_s21  }
  0x5b   :  { %s2316_s20 = scalar_lea.hbm %s3202_s11, 256 }
  0x5c   :  { %p2317_p12 = scmp.ne.s32.totalorder %s3202_s11, %s2316_s20  ;;  %p2320_p13 = scmp.lt.u32.totalorder %s2316_s20, %s3202_s11 }
  0x5e   :  { %p2322_p0 = pnand %p2320_p13, %p2317_p12 }
  0x60   :  { %2325 = shalt.err (!%p2322_p0)
}
  0x61   :  { %s2326_s15 = scalar_lea.vmem %s2753_s30, 256  ;;  %p2331_p2 = scmp.lt.s32.totalorder %s2753_s30, %s2753_s30 }
  0x62   :  { %p2327_p1 = scmp.ne.s32.totalorder %s2753_s30, %s2326_s15  ;;  %p2332_p3 = scmp.lt.s32.totalorder %s2326_s15, %s2326_s15 }
  0x64   :  { %p2333_p4 = por %p2332_p3, %p2331_p2 }
  0x66   :  { %p2334_p5 = pnand %p2333_p4, %p2327_p1 }
  0x68   :  { %2337 = shalt.err (!%p2334_p5)
}
  0x69   :  { %166 = dma.hbm_to_vmem [thread:$0]  %s3202_s11, 256, %s2753_s30, [#allocation21], %s2592_s28, %s2592_s28, %s2593_s21  }
  0x6a   :  { %s2596_s16 = smov [#allocation2]   ;;  %s2597_s18 = smov [#allocation7]  }
  0x6b   :  { %s35_s17 = sshll.u32 %s2596_s16, 4  ;;  %s56_s7 = sshll.u32 %s2597_s18, 4  ;;  %s36_s17 = int_to_ptr.vmem [resolvable:$true] %s35_s17  ;;  %s2790_s7 = int_to_ptr.vmem [resolvable:$true] %s56_s7 }
  0x6c   :  { %s2338_s5 = scalar_lea.hbm %s3191_s0, 128 }
  0x6d   :  { %p2339_p6 = scmp.ne.s32.totalorder %s3191_s0, %s2338_s5  ;;  %p2342_p7 = scmp.lt.u32.totalorder %s2338_s5, %s3191_s0 }
  0x6f   :  { %p2344_p8 = pnand %p2342_p7, %p2339_p6 }
  0x71   :  { %2347 = shalt.err (!%p2344_p8)
}
  0x72   :  { %s2348_s11 = scalar_lea.vmem %s36_s17, 128  ;;  %p2353_p10 = scmp.lt.s32.totalorder %s36_s17, %s36_s17 }
  0x73   :  { %p2349_p9 = scmp.ne.s32.totalorder %s36_s17, %s2348_s11  ;;  %p2354_p11 = scmp.lt.s32.totalorder %s2348_s11, %s2348_s11 }
  0x75   :  { %p2355_p12 = por %p2354_p11, %p2353_p10 }
  0x77   :  { %p2356_p13 = pnand %p2355_p12, %p2349_p9 }
  0x79   :  { %2359 = shalt.err (!%p2356_p13)
}
  0x7a   :  { %38 = dma.hbm_to_vmem [thread:$0]  %s3191_s0, 128, %s36_s17, [#allocation3]  }
  0x7b   :  { %s2360_s9 = scalar_lea.hbm %s3193_s2, 1024 }
  0x7c   :  { %p2361_p0 = scmp.ne.s32.totalorder %s3193_s2, %s2360_s9  ;;  %p2364_p1 = scmp.lt.u32.totalorder %s2360_s9, %s3193_s2 }
  0x7e   :  { %p2366_p2 = pnand %p2364_p1, %p2361_p0 }
  0x80   :  { %2369 = shalt.err (!%p2366_p2)
}
  0x81   :  { %s2370_s19 = scalar_lea.vmem %s2790_s7, 1024  ;;  %p2375_p4 = scmp.lt.s32.totalorder %s2790_s7, %s2790_s7 }
  0x82   :  { %p2371_p3 = scmp.ne.s32.totalorder %s2790_s7, %s2370_s19  ;;  %p2376_p5 = scmp.lt.s32.totalorder %s2370_s19, %s2370_s19 }
  0x84   :  { %p2377_p6 = por %p2376_p5, %p2375_p4 }
  0x86   :  { %p2378_p7 = pnand %p2377_p6, %p2371_p3 }
  0x88   :  { %2381 = shalt.err (!%p2378_p7)
}
  0x89   :  { %62 = dma.hbm_to_vmem [thread:$0]  %s3193_s2, 1024, %s2790_s7, [#allocation6], %s2592_s28, %s2592_s28, %s2593_s21  }
  0x8a   :  { %s2598_s5 = smov [#allocation10]   ;;  %s2599_s20 = smov [#allocation13]  }
  0x8b   :  { %s78_s25 = sshll.u32 %s2598_s5, 4  ;;  %s102_s1 = sshll.u32 %s2599_s20, 4  ;;  %s79_s25 = int_to_ptr.vmem [resolvable:$true] %s78_s25  ;;  %s2824_s1 = int_to_ptr.vmem [resolvable:$true] %s102_s1 }
  0x8c   :  { %s2382_s30 = scalar_lea.hbm %s3195_s4, 128 }
  0x8d   :  { %p2383_p8 = scmp.ne.s32.totalorder %s3195_s4, %s2382_s30  ;;  %p2386_p9 = scmp.lt.u32.totalorder %s2382_s30, %s3195_s4 }
  0x8f   :  { %p2388_p10 = pnand %p2386_p9, %p2383_p8 }
  0x91   :  { %2391 = shalt.err (!%p2388_p10)
}
  0x92   :  { %s2392_s2 = scalar_lea.vmem %s79_s25, 128  ;;  %p2397_p12 = scmp.lt.s32.totalorder %s79_s25, %s79_s25 }
  0x93   :  { %p2393_p11 = scmp.ne.s32.totalorder %s79_s25, %s2392_s2  ;;  %p2398_p13 = scmp.lt.s32.totalorder %s2392_s2, %s2392_s2 }
  0x95   :  { %p2399_p0 = por %p2398_p13, %p2397_p12 }
  0x97   :  { %p2400_p1 = pnand %p2399_p0, %p2393_p11 }
  0x99   :  { %2403 = shalt.err (!%p2400_p1)
}
  0x9a   :  { %84 = dma.hbm_to_vmem [thread:$0]  %s3195_s4, 128, %s79_s25, [#allocation9], %s2592_s28, %s2592_s28, %s2593_s21  }
  0x9b   :  { %s2404_s27 = scalar_lea.hbm %s3197_s6, 1024 }
  0x9c   :  { %p2405_p2 = scmp.ne.s32.totalorder %s3197_s6, %s2404_s27  ;;  %p2408_p3 = scmp.lt.u32.totalorder %s2404_s27, %s3197_s6 }
  0x9e   :  { %p2410_p4 = pnand %p2408_p3, %p2405_p2 }
  0xa0   :  { %2413 = shalt.err (!%p2410_p4)
}
  0xa1   :  { %s2414_s20 = scalar_lea.vmem %s2824_s1, 1024  ;;  %p2419_p6 = scmp.lt.s32.totalorder %s2824_s1, %s2824_s1 }
  0xa2   :  { %p2415_p5 = scmp.ne.s32.totalorder %s2824_s1, %s2414_s20  ;;  %p2420_p7 = scmp.lt.s32.totalorder %s2414_s20, %s2414_s20 }
  0xa4   :  { %p2421_p8 = por %p2420_p7, %p2419_p6 }
  0xa6   :  { %p2422_p9 = pnand %p2421_p8, %p2415_p5 }
  0xa8   :  { %2425 = shalt.err (!%p2422_p9)
}
  0xa9   :  { %108 = dma.hbm_to_vmem [thread:$0]  %s3197_s6, 1024, %s2824_s1, [#allocation12], %s2592_s28, %s2592_s28, %s2593_s21  }
  0xaa   :  { %s2600_s22 = smov [#allocation16]   ;;  %s2426_s29 = scalar_lea.hbm %s3199_s8, 128 }
  0xab   :  { %s126_s11 = sshll.u32 %s2600_s22, 4  ;;  %p2427_p10 = scmp.ne.s32.totalorder %s3199_s8, %s2426_s29  ;;  %s127_s11 = int_to_ptr.vmem [resolvable:$true] %s126_s11 }
  0xac   :  { %p2430_p11 = scmp.lt.u32.totalorder %s2426_s29, %s3199_s8 }
  0xae   :  { %p2432_p12 = pnand %p2430_p11, %p2427_p10 }
  0xb0   :  { %2435 = shalt.err (!%p2432_p12)
}
  0xb1   :  { %s2436_s3 = scalar_lea.vmem %s127_s11, 128  ;;  %p2441_p0 = scmp.lt.s32.totalorder %s127_s11, %s127_s11 }
  0xb2   :  { %p2437_p13 = scmp.ne.s32.totalorder %s127_s11, %s2436_s3  ;;  %p2442_p1 = scmp.lt.s32.totalorder %s2436_s3, %s2436_s3 }
  0xb4   :  { %p2443_p2 = por %p2442_p1, %p2441_p0 }
  0xb6   :  { %p2444_p3 = pnand %p2443_p2, %p2437_p13 }
  0xb8   :  { %2447 = shalt.err (!%p2444_p3)
}
  0xb9   :  { %s2601_s6 = smov 16   ;;  %s2602_s28 = smov 1  }
  0xba   :  { %132 = dma.hbm_to_vmem [thread:$0]  %s3199_s8, 128, %s127_s11, [#allocation15], %s2601_s6, %s2601_s6, %s2602_s28  }
  0xbb   :  { %s2603_s16 = smov [#allocation19]   ;;  %s2604_s27 = smov [#allocation22]  }
  0xbc   :  { %s151_s18 = sshll.u32 %s2603_s16, 4  ;;  %s173_s19 = sshll.u32 %s2604_s27, 4  ;;  %s152_s18 = int_to_ptr.vmem [resolvable:$true] %s151_s18  ;;  %s174_s19 = int_to_ptr.vmem [resolvable:$true] %s173_s19 }
  0xbd   :  { %s2448_s5 = scalar_lea.hbm %s3201_s10, 16 }
  0xbe   :  { %p2449_p4 = scmp.ne.s32.totalorder %s3201_s10, %s2448_s5  ;;  %p2452_p5 = scmp.lt.u32.totalorder %s2448_s5, %s3201_s10 }
  0xc0   :  { %p2454_p6 = pnand %p2452_p5, %p2449_p4 }
  0xc2   :  { %2457 = shalt.err (!%p2454_p6)
}
  0xc3   :  { %s2458_s8 = scalar_lea.vmem %s152_s18, 16  ;;  %s2462_s11 = scalar_lea.vmem %s152_s18, 32 }
  0xc4   :  { %p2459_p7 = scmp.ne.s32.totalorder %s152_s18, %s2458_s8  ;;  %p2463_p8 = scmp.lt.s32.totalorder %s152_s18, %s152_s18 }
  0xc5   :  { %p2464_p9 = scmp.lt.s32.totalorder %s2462_s11, %s2458_s8 }
  0xc7   :  { %p2465_p10 = por %p2464_p9, %p2463_p8 }
  0xc9   :  { %p2466_p11 = pnand %p2465_p10, %p2459_p7 }
  0xcb   :  { %2469 = shalt.err (!%p2466_p11)
}
  0xcc   :  { %154 = dma.hbm_to_vmem [thread:$0]  %s3201_s10, 16, %s152_s18, [#allocation18]  }
  0xcd   :  { %s2470_s9 = scalar_lea.hbm %s3203_s12, 16 }
  0xce   :  { %p2471_p12 = scmp.ne.s32.totalorder %s3203_s12, %s2470_s9  ;;  %p2474_p13 = scmp.lt.u32.totalorder %s2470_s9, %s3203_s12 }
  0xd0   :  { %p2476_p0 = pnand %p2474_p13, %p2471_p12 }
  0xd2   :  { %2479 = shalt.err (!%p2476_p0)
}
  0xd3   :  { %s2480_s28 = scalar_lea.vmem %s174_s19, 16  ;;  %s2484_s21 = scalar_lea.vmem %s174_s19, 32 }
  0xd4   :  { %p2481_p1 = scmp.ne.s32.totalorder %s174_s19, %s2480_s28  ;;  %p2485_p2 = scmp.lt.s32.totalorder %s174_s19, %s174_s19 }
  0xd5   :  { %p2486_p3 = scmp.lt.s32.totalorder %s2484_s21, %s2480_s28 }
  0xd7   :  { %p2487_p4 = por %p2486_p3, %p2485_p2 }
  0xd9   :  { %p2488_p5 = pnand %p2487_p4, %p2481_p1 }
  0xdb   :  { %2491 = shalt.err (!%p2488_p5)
}
  0xdc   :  { %176 = dma.hbm_to_vmem [thread:$0]  %s3203_s12, 16, %s174_s19, [#allocation21]  }
  0xdd   :  { %2552 = dma.done.wait [#allocation3], 128  }
  0xde   :  { %2553 = vsyncadd [#allocation3], 4294967168 }
  0xdf   :  { %2554 = dma.done.wait [#allocation6], 1920  }
  0xe0   :  { %2555 = vsyncadd [#allocation6], 4294965376 }
  0xe1   :  { %2556 = dma.done.wait [#allocation9], 256  }
  0xe2   :  { %2557 = vsyncadd [#allocation9], 4294967040 }
  0xe3   :  { %2558 = dma.done.wait [#allocation12], 1280  }
  0xe4   :  { %2559 = vsyncadd [#allocation12], 4294966016 }
  0xe5   :  { %2560 = dma.done.wait [#allocation15], 1152  }
  0xe6   :  { %2561 = vsyncadd [#allocation15], 4294966144 }
  0xe7   :  { %2562 = dma.done.wait [#allocation18], 272  }
  0xe8   :  { %2563 = vsyncadd [#allocation18], 4294967024 }
  0xe9   :  { %2564 = dma.done.wait [#allocation21], 272  }
  0xea   :  { %2565 = vsyncadd [#allocation21], 4294967024  ;;  %v217_v0 = vlaneseq  ;;  %v2900_v2 = vld [vmem:[#allocation8] sm:$0xff]  ;;  %v2918_v11 = vld [vmem:[#allocation19] ss:$0 sm:$0xff]  ;;  %v2924_v14 = vmov 0.0  }
  0xeb   :  { %v2902_v3 = vld [vmem:[#allocation16] sm:$0x1]  ;;  %v2904_v4 = vld [vmem:[#allocation16 + $0x1] sm:$0x1]  ;;  %v2906_v5 = vld [vmem:[#allocation16 + $0x2] sm:$0x1] }
  0xec   :  { %v2898_v1 = vand.u32 127, %v217_v0  ;;  %v2908_v6 = vld [vmem:[#allocation16 + $0x3] sm:$0x1]  ;;  %v2910_v7 = vld [vmem:[#allocation16 + $0x4] sm:$0x1]  ;;  %v2926_v15 = vmov 0.0  }
  0xed   :  { %v2912_v8 = vld [vmem:[#allocation16 + $0x5] sm:$0x1]  ;;  %v2914_v9 = vld [vmem:[#allocation16 + $0x6] sm:$0x1]  ;;  %v2916_v10 = vld [vmem:[#allocation16 + $0x7] sm:$0x1] }
  0xee   :  { %v2920_v12 = vld [vmem:[#allocation22] ss:$0 sm:$0xff]  ;;  %v230_v13 = vld [vmem:[#allocation2] sm:$0xff]   ;;  %s2928_s12 = smov 0  }
  0xef LB: > { %v2605_v16 = vmov 0   ;;  %v2606_v17 = vmov 0.0   ;;  %v2131_v18 = vld [vmem:[#allocation7] sm:$0xff]   ;;  %v2132_v19 = vld [vmem:[#allocation7 + $0x8] sm:$0xff]   ;;  %vm2607_vm0 = vmmov 0   ;;  %v354_v20 = vpack.c.bf16 %v2580_v15, %v2580_v15  ;;  %v2133_v21 = vld [vmem:[#allocation7 + $0x10] sm:$0xff]   ;;  %s2584_s12 = sphi %s2928_s12, %s236_s12   ;;  %v2580_v15 = vphi %v2926_v15, %v3206_v15   ;;  %v2576_v14 = vphi %v2924_v14, %v2968_v14   ;;  %v2572_v13 = vphi %v230_v13, %v1725_v13  }
  0xf0   : > { %2129 = vset.pattern.permute.xlu0 %v2605_v16  ;;  %1923 = vmatprep.subr.bf16.mxu0 %v2606_v17  ;;  %s2608_s16 = smov 32   ;;  %v2139_v22 = vld [vmem:[#allocation11] sm:$0xff]   ;;  %v2140_v23 = vld [vmem:[#allocation11 + $0x8] sm:$0xff]   ;;  %v2135_v25 = vld [vmem:[#allocation7 + $0x20] sm:$0xff]   ;;  %vm374_vm3 = vcmask 261120   ;;  %vm424_vm4 = vcmask 130048  }
  0xf1   : > { %241 = vperm.xlu0 %2129, %v2572_v13   ;;  %1943 = vmatprep.subr.bf16.mxu1 %v2606_v17  ;;  %v2134_v24 = vld [vmem:[#allocation7 + $0x18] sm:$0xff]   ;;  %v2136_v26 = vld [vmem:[#allocation7 + $0x28] sm:$0xff]   ;;  %v2137_v27 = vld [vmem:[#allocation7 + $0x30] sm:$0xff]   ;;  %v2609_v31 = vmov 1.0|1.0   ;;  %s2610_s18 = smov 64  }
  0xf2   : > { %1924 = vmatpush3.bf16.msra.mxu0 %v2131_v18  ;;  %1939 = vmatprep.mubr.msk.bf16.mxu0 %vm2607_vm0, %v2606_v17  ;;  %v2138_v28 = vld [vmem:[#allocation7 + $0x38] sm:$0xff]   ;;  %v2141_v30 = vld [vmem:[#allocation10] sm:$0xff]   ;;  %v2142_v58 = vld [vmem:[#allocation13] sm:$0xff]   ;;  %v2611_v62 = vmov 1966171168   ;;  %v499_v15 = vshrl.u32 %v217_v0, 7 }
  0xf3   : > { %1925 = vmatprep.subr.bf16.mxu0 %v2606_v17  ;;  %1947 = vmatprep.mubr.msk.bf16.mxu1 %vm2607_vm0, %v2606_v17  ;;  %v2143_v59 = vld [vmem:[#allocation13 + $0x10] sm:$0xff]   ;;  %v559_v60 = vsel %vm374_vm3, %v2142_v58, 0  ;;  %v496_v63 = vunpack.c.l.s4 %v2611_v62  ;;  %vm1007_vm5 = vcmp.gt.f32.partialorder %v2902_v3, 0.0  ;;  %vm1023_vm6 = vcmask 122880   ;;  %s3137_s27 = sshll.u32 %s2584_s12, 3  ;;  %s236_s12 = sadd.s32 1, %s2584_s12  }
  0xf4   : > { %2130 = vset.pattern.permute.xlu1 %v2605_v16  ;;  %1944 = vmatpush3.bf16.msra.mxu1 %v2139_v22  ;;  %v675_v61 = vsel %vm374_vm3, %v2143_v59, 0  ;;  %v546_v22 = vsub.s32 0, %v499_v15  ;;  %v2148_v59 = vld [vmem:[#allocation13 + $0x28] sm:$0xff]   ;;  %vm1008_vm7 = vcmp.gt.f32.partialorder %v2904_v4, 0.0  ;;  %vm1009_vm8 = vcmp.gt.f32.partialorder %v2906_v5, 0.0  ;;  %s1735_s19 = scalar_lea.vmem [#allocation5], %s3137_s27 }
  0xf5   : > { %360 = vrot.lane.b32.xlu0 %v354_v20, %s2608_s16  ;;  %1945 = vmatprep.subr.bf16.mxu1 %v2606_v17  ;;  %v497_v13 = vunpack.c.0.s8 %v496_v63  ;;  %v2149_v63 = vld [vmem:[#allocation13 + $0x38] sm:$0xff]   ;;  %vm1011_vm9 = vcmp.gt.f32.partialorder %v2910_v7, 0.0  ;;  %vm1010_vm10 = vcmp.gt.f32.partialorder %v2908_v6, 0.0  ;;  %vm1013_vm11 = vcmp.gt.f32.partialorder %v2914_v9, 0.0  ;;  %s1745_s0 = scalar_lea.vmem [#allocation23], %s3137_s27  ;;  %s1748_s17 = scalar_lea.vmem [#allocation24], %s3137_s27 }
  0xf6   : > { %1926 = vmatpush3.bf16.msra.mxu0 %v2132_v19  ;;  %vm1012_vm12 = vcmp.gt.f32.partialorder %v2912_v8, 0.0  ;;  %vm1014_vm13 = vcmp.gt.f32.partialorder %v2916_v10, 0.0  ;;  %vm1571_vm14 = vcmask 1041409   ;;  %vm1574_vm15 = vcmask 1042434   ;;  %p233_p6 = scmp.ge.s32.totalorder %s236_s12, 7  }
  0xf7   : > { %1927 = vmatprep.subr.bf16.mxu0 %v2606_v17  ;;  %v500_v18 = vsub.s32 %v497_v13, %v499_v15  ;;  %v965_v15 = vsel %vm374_vm3, %v2149_v63, 0  ;;  %s2612_s5 = smov (%p233_p6), [#allocation23]   ;;  %s2613_s4 = smov (%p233_p6), [#allocation24]  }
  0xf8   : > { %1946 = vmatpush3.bf16.msra.mxu1 %v2140_v23  ;;  %s1755_s20 = sshll.u32 (%p233_p6), %s2612_s5, 4  ;;  %s1767_s25 = sshll.u32 (%p233_p6), %s2613_s4, 4  ;;  %s1756_s20 = int_to_ptr.vmem [resolvable:$true] %s1755_s20  ;;  %s3154_s25 = int_to_ptr.vmem [resolvable:$true] %s1767_s25 }
  0xf9   : > { %1951 = vmatprep.subr.bf16.mxu1 %v2606_v17  ;;  %s2492_s22 = scalar_lea.vmem (%p233_p6), %s1756_s20, 896  ;;  %p2497_p8 = scmp.lt.s32.totalorder (%p233_p6), %s1756_s20, %s1756_s20 }
  0xfa   : > { %1928 = vmatpush3.bf16.msra.mxu0 %v2133_v21  ;;  %p2493_p7 = scmp.ne.s32.totalorder (%p233_p6), %s1756_s20, %s2492_s22  ;;  %p2498_p9 = scmp.lt.s32.totalorder (%p233_p6), %s2492_s22, %s2492_s22 }
  0xfb   : > { %1929 = vmatprep.subr.bf16.mxu0 %v2606_v17 }
  0xfc   :  { %p2499_p10 = por (%p233_p6), %p2498_p9, %p2497_p8 }
  0xfe   : > { %1930 = vmatpush3.bf16.msra.mxu0 %v2134_v24  ;;  %p2500_p11 = pnand (%p233_p6), %p2499_p10, %p2493_p7 }
  0xff   : > { %1931 = vmatprep.subr.bf16.mxu0 %v2606_v17 }
 0x102   : > { %1932 = vmatpush3.bf16.msra.mxu0 %v2135_v25 }
 0x103   : > { %1933 = vmatprep.subr.bf16.mxu0 %v2606_v17 }
 0x106   : > { %1934 = vmatpush3.bf16.msra.mxu0 %v2136_v26 }
 0x107   : > { %1935 = vmatprep.subr.bf16.mxu0 %v2606_v17 }
 0x10a   : > { %1936 = vmatpush3.bf16.msra.mxu0 %v2137_v27 }
 0x10b   : > { %1937 = vmatprep.subr.bf16.mxu0 %v2606_v17 }
 0x10e   : > { %1938 = vmatpush3.bf16.msra.mxu0 %v2138_v28 }
 0x10f   : > { %1969 = vmatprep.subr.bf16.mxu0 %v2606_v17 }
 0x170   : > { %v242_v29 = vpop.permute.xlu0 %241 }
 0x171   : > { %vm243_vm1 = vcmp.eq.s32.totalorder %v2898_v1, %v242_v29 }
 0x172   : > { %vm1818_vm2 = vmpackc.low %vm243_vm1, %vm243_vm1  ;;  %vm1580_vm1 = vcmask 1044484  }
 0x173   : > { %1940 = vmatmul.mubr.msk.bf16.vlgmr.msra.gmra.mrb[0].mxu0 %vm1818_vm2, %v2609_v31  ;;  %vm1583_vm2 = vcmask 1045509  }
 0x174   : > { %v361_v32 = vpop.permute.xlu0 %360  ;;  %1971 = vmatprep.mubr.msk.bf16.mxu0 %vm2607_vm0, %v2606_v17  ;;  %1970 = vmatpush3.bf16.xpose.msra.mxu0 %v675_v61  ;;  %v849_v61 = vsel %vm374_vm3, %v2148_v59, 0 }
 0x175   : > { %1948 = vmatmul.mubr.msk.bf16.vlgmr.msra.gmra.mrb[0].mxu1 %vm374_vm3, %v361_v32  ;;  %1981 = vmatprep.subr.bf16.mxu0 %v2606_v17 }
 0x176   : > { %1952 = vmatpush3.bf16.msra.mxu1 %v2141_v30  ;;  %1953 = vmatprep.mubr.msk.bf16.mxu1 %vm2607_vm0, %v2606_v17 }
 0x177   : > { %1957 = vmatprep.subr.bf16.mxu1 %v2606_v17 }
 0x246   : > { %v345_v33 = vpop.f32.mrb[0].mxu0 }
 0x247   : > { %v351_v34 = vpack.c.bf16 %v345_v33, %v345_v33  ;;  %v1941_v35 = vpop.f32.mrb[1].mxu0 }
 0x248   : > { %v348_v36 = vpop.f32.mrb[2].mxu0  ;;  %v412_v37 = vpop.f32.mrb[0].mxu1 }
 0x249   : > { %v1942_v38 = vpop.f32.mrb[3].mxu0  ;;  %1954 = vmatmul.mubr.msk.bf16.vlgmr.msra.gmra.mrb[4].mxu1 %vm424_vm4, %v351_v34  ;;  %v1949_v39 = vpop.f32.mrb[1].mxu1 }
 0x24a   : > { %v415_v40 = vpop.f32.mrb[2].mxu1  ;;  %1959 = vmatprep.mubr.msk.bf16.mxu1 %vm2607_vm0, %v2606_v17  ;;  %1958 = vmatpush3.bf16.xpose.msra.mxu1 %v559_v60 }
 0x24b   : > { %v1950_v41 = vpop.f32.mrb[3].mxu1  ;;  %1963 = vmatprep.subr.bf16.mxu1 %v2606_v17 }
 0x31c   : > { %v462_v42 = vpop.f32.mrb[4].mxu1 }
 0x31d   : > { %v463_v43 = vadd.f32 %v462_v42, %v412_v37  ;;  %v1955_v44 = vpop.f32.mrb[5].mxu1 }
 0x31e   : > { %v465_v45 = vpop.f32.mrb[6].mxu1 }
 0x31f   : > { %v468_v46 = vadd.f32 %v463_v43, %v2900_v2  ;;  %v1956_v47 = vpop.f32.mrb[7].mxu1 }
 0x321   : > { %2162 = vtanh.f32 %v468_v46  ;;  %v1825_v49 = vmul.f32 -1.442695, %v468_v46 }
 0x323   : > { %2164 = vpow2.f32 %v1825_v49 }
 0x32b   : > { %v2163_v48 = vpop.eup %2162 }
 0x32c   : > { %478 = vrot.lane.b32.xlu1 %v2163_v48, %s2610_s18  ;;  %v2144_v48 = vld [vmem:[#allocation13 + $0x8] sm:$0xff]  }
 0x32d   : > { %v2165_v50 = vpop.eup %2164  ;;  %v617_v49 = vsel %vm374_vm3, %v2144_v48, 0 }
 0x32e   : > { %v472_v51 = vadd.f32 1.0, %v2165_v50  ;;  %v2145_v50 = vld [vmem:[#allocation13 + $0x20] sm:$0xff]  }
 0x330   : > { %2166 = vrcp.f32 %v472_v51 }
 0x33a   : > { %v2167_v52 = vpop.eup %2166 }
 0x33b   : > { %v476_v55 = vmul.f32 %v2576_v14, %v2167_v52 }
 0x39e   : > { %v479_v53 = vpop.permute.xlu1 %478 }
 0x39f   : > { %v481_v54 = vmul.f32 %v2167_v52, %v479_v53  ;;  %v2146_v53 = vld [vmem:[#allocation13 + $0x18] sm:$0xff]  }
 0x3a1   : > { %483 = vrot.lane.b32.xlu1 %v481_v54, %s2608_s16 }
 0x413   : > { %v484_v56 = vpop.permute.xlu1 %483 }
 0x414   : > { %v2968_v14 = vadd.f32 %v484_v56, %v476_v55   ;;  %v733_v55 = vsel %vm374_vm3, %v2146_v53, 0  ;;  %v2147_v56 = vld [vmem:[#allocation13 + $0x30] sm:$0xff]  }
 0x415   : > { %v907_v58 = vsel %vm374_vm3, %v2147_v56, 0 }
 0x416   : > { %2168 = vtanh.f32 %v2968_v14 }
 0x420   : > { %v2169_v57 = vpop.eup %2168 }
 0x421   : > { %489 = vrot.lane.b32.xlu0 %v2169_v57, %s2610_s18 }
 0x493   : > { %v490_v16 = vpop.permute.xlu0 %489 }
 0x494   : > { %v2976_v19 = vmul.f32 %v2167_v52, %v490_v16   ;;  %v791_v52 = vsel %vm374_vm3, %v2145_v50, 0 }
 0x496   : > { %v2980_v20 = vpack.c.bf16 %v2976_v19, %v2976_v19 }
 0x498   : > { %v501_v21 = vrot.slane %v2980_v20, %v500_v18 }
 0x49a   : > { %v502_v23 = vcombine.high %v501_v21, %v501_v21  ;;  %v509_v24 = vrot.slane %v501_v21, %v500_v18 }
 0x49c   : > { %v516_v25 = vrot.slane %v502_v23, %v500_v18  ;;  %v1826_v26 = vpack.i.b16 %v509_v24, %v509_v24  ;;  %v520_v27 = vunpack.i.h.s16 %v509_v24  ;;  %v517_v28 = vcombine.high %v509_v24, %v509_v24 }
 0x49e   : > { %v547_v29 = vrot.slane %v1826_v26, %v546_v22  ;;  %v601_v30 = vpack.i.b16 %v520_v27, %v520_v27  ;;  %v1831_v31 = vpack.i.b16 %v516_v25, %v516_v25  ;;  %v522_v32 = vunpack.i.h.s16 %v516_v25 }
 0x49f   : > { %v524_v35 = vunpack.i.h.s16 %v517_v28  ;;  %v518_v36 = vcombine.high %v516_v25, %v516_v25  ;;  %v1836_v38 = vpack.i.b16 %v517_v28, %v517_v28 }
 0x4a0   : > { %548 = vrot.lane.b32.xlu1 %v547_v29, %s2608_s16  ;;  %v605_v33 = vrot.slane %v601_v30, %v546_v22  ;;  %v717_v34 = vpack.i.b16 %v522_v32, %v522_v32  ;;  %v663_v37 = vrot.slane %v1831_v31, %v546_v22 }
 0x4a1   : > { %v833_v40 = vpack.i.b16 %v524_v35, %v524_v35  ;;  %v526_v41 = vunpack.i.h.s16 %v518_v36  ;;  %v779_v42 = vrot.slane %v1836_v38, %v546_v22  ;;  %v1841_v43 = vpack.i.b16 %v518_v36, %v518_v36 }
 0x4a2   : > { %606 = vrot.lane.b32.xlu0 %v605_v33, %s2608_s16  ;;  %v721_v39 = vrot.slane %v717_v34, %v546_v22 }
 0x4a3   : > { %v837_v44 = vrot.slane %v833_v40, %v546_v22  ;;  %v949_v45 = vpack.i.b16 %v526_v41, %v526_v41  ;;  %v895_v46 = vrot.slane %v1841_v43, %v546_v22 }
 0x4a4   : > { %664 = vrot.lane.b32.xlu1 %v663_v37, %s2608_s16 }
 0x4a5   : > { %v953_v47 = vrot.slane %v949_v45, %v546_v22 }
 0x4a6   : > { %722 = vrot.lane.b32.xlu0 %v721_v39, %s2608_s16 }
 0x4a8   : > { %780 = vrot.lane.b32.xlu1 %v779_v42, %s2608_s16 }
 0x4aa   : > { %838 = vrot.lane.b32.xlu0 %v837_v44, %s2608_s16 }
 0x4ac   : > { %896 = vrot.lane.b32.xlu1 %v895_v46, %s2608_s16 }
 0x4ae   : > { %954 = vrot.lane.b32.xlu0 %v953_v47, %s2608_s16 }
 0x512   : > { %v549_v51 = vpop.permute.xlu1 %548 }
 0x513   : > { %1960 = vmatmul.mubr.msk.bf16.vlgmr.msra.gmra.mrb[8].mxu1 %vm374_vm3, %v549_v51 }
 0x514   : > { %1964 = vmatpush3.bf16.xpose.msra.mxu1 %v617_v49  ;;  %1965 = vmatprep.mubr.msk.bf16.mxu1 %vm2607_vm0, %v2606_v17  ;;  %v607_v57 = vpop.permute.xlu0 %606 }
 0x515   : > { %1975 = vmatprep.subr.bf16.mxu1 %v2606_v17 }
 0x516   : > { %v665_v54 = vpop.permute.xlu1 %664 }
 0x517   : > { %1972 = vmatmul.mubr.msk.bf16.vlgmr.msra.gmra.mrb[4].mxu0 %vm374_vm3, %v665_v54 }
 0x518   : > { %1982 = vmatpush3.bf16.xpose.msra.mxu0 %v791_v52  ;;  %1983 = vmatprep.mubr.msk.bf16.mxu0 %vm2607_vm0, %v2606_v17  ;;  %v723_v62 = vpop.permute.xlu0 %722 }
 0x519   : > { %1993 = vmatprep.subr.bf16.mxu0 %v2606_v17 }
 0x51a   : > { %v781_v60 = vpop.permute.xlu1 %780 }
 0x51b   : > { %1966 = vmatmul.mubr.msk.bf16.vlgmr.msra.gmra.mrb[12].mxu1 %vm374_vm3, %v607_v57 }
 0x51c   : > { %1976 = vmatpush3.bf16.xpose.msra.mxu1 %v733_v55  ;;  %1977 = vmatprep.mubr.msk.bf16.mxu1 %vm2607_vm0, %v2606_v17  ;;  %v839_v16 = vpop.permute.xlu0 %838 }
 0x51d   : > { %1987 = vmatprep.subr.bf16.mxu1 %v2606_v17 }
 0x51e   : > { %v897_v13 = vpop.permute.xlu1 %896 }
 0x51f   : > { %1984 = vmatmul.mubr.msk.bf16.vlgmr.msra.gmra.mrb[8].mxu0 %vm374_vm3, %v781_v60 }
 0x520   : > { %1994 = vmatpush3.bf16.xpose.msra.mxu0 %v907_v58  ;;  %1995 = vmatprep.mubr.msk.bf16.mxu0 %vm2607_vm0, %v2606_v17  ;;  %v955_v18 = vpop.permute.xlu0 %954 }
 0x521   : > { %2005 = vmatprep.subr.bf16.mxu0 %v2606_v17 }
 0x523   : > { %1978 = vmatmul.mubr.msk.bf16.vlgmr.msra.gmra.mrb[16].mxu1 %vm374_vm3, %v723_v62 }
 0x524   : > { %1988 = vmatpush3.bf16.xpose.msra.mxu1 %v849_v61  ;;  %1989 = vmatprep.mubr.msk.bf16.mxu1 %vm2607_vm0, %v2606_v17 }
 0x525   : > { %1999 = vmatprep.subr.bf16.mxu1 %v2606_v17 }
 0x527   : > { %1996 = vmatmul.mubr.msk.bf16.vlgmr.msra.gmra.mrb[12].mxu0 %vm374_vm3, %v897_v13 }
 0x528   : > { %2007 = vmatprep.mubr.msk.bf16.mxu0 %vm2607_vm0, %v2606_v17 }
 0x52b   : > { %1990 = vmatmul.mubr.msk.bf16.vlgmr.msra.gmra.mrb[20].mxu1 %vm374_vm3, %v839_v16 }
 0x52c   : > { %2000 = vmatpush3.bf16.xpose.msra.mxu1 %v965_v15  ;;  %2001 = vmatprep.mubr.msk.bf16.mxu1 %vm2607_vm0, %v2606_v17 }
 0x52d   : > { %2011 = vmatprep.subr.bf16.mxu1 %v2606_v17 }
 0x533   : > { %2002 = vmatmul.mubr.msk.bf16.vlgmr.msra.gmra.mrb[24].mxu1 %vm374_vm3, %v955_v18 }
 0x534   : > { %2013 = vmatprep.mubr.msk.bf16.mxu1 %vm2607_vm0, %v2606_v17 }
 0x5e6   : > { %v595_v21 = vpop.f32.mrb[8].mxu1 }
 0x5e7   : > { %v3028_v22 = vsel %vm1007_vm5, %v595_v21, -1e+30  ;;  %v1961_v23 = vpop.f32.mrb[9].mxu1  ;;  %vm1589_vm5 = vcmask 1047559  }
 0x5e8   : > { %v598_v24 = vpop.f32.mrb[10].mxu1  ;;  %v1024_v25 = vsel %vm1023_vm6, %v3028_v22, -inf }
 0x5e9   : > { %1025 = vmax.xlane.f32.xlu1 %v1024_v25  ;;  %v1962_v26 = vpop.f32.mrb[11].mxu1 }
 0x5ea   : > { %v711_v27 = vpop.f32.mrb[4].mxu0 }
 0x5eb   : > { %v1973_v28 = vpop.f32.mrb[5].mxu0  ;;  %v1017_v36 = vsel %vm1009_vm8, %v711_v27, -1e+30  ;;  %vm1746_vm8 = vcmask 7168  }
 0x5ec   : > { %v714_v29 = vpop.f32.mrb[6].mxu0  ;;  %v1030_v41 = vsel %vm1023_vm6, %v1017_v36, -inf }
 0x5ed   : > { %v1974_v30 = vpop.f32.mrb[7].mxu0 }
 0x5ee   : > { %v653_v31 = vpop.f32.mrb[12].mxu1 }
 0x5ef   : > { %v1016_v32 = vsel %vm1008_vm7, %v653_v31, -1e+30  ;;  %v1967_v33 = vpop.f32.mrb[13].mxu1 }
 0x5f0   : > { %v656_v34 = vpop.f32.mrb[14].mxu1  ;;  %v1027_v35 = vsel %vm1023_vm6, %v1016_v32, -inf }
 0x5f1   : > { %1028 = vmax.xlane.f32.xlu0 %v1027_v35  ;;  %v1968_v37 = vpop.f32.mrb[15].mxu1 }
 0x5f2   : > { %v827_v38 = vpop.f32.mrb[8].mxu0 }
 0x5f3   : > { %v1985_v39 = vpop.f32.mrb[9].mxu0  ;;  %v1019_v42 = vsel %vm1011_vm9, %v827_v38, -1e+30 }
 0x5f4   : > { %v830_v40 = vpop.f32.mrb[10].mxu0  ;;  %v1036_v48 = vsel %vm1023_vm6, %v1019_v42, -inf }
 0x5f5   : > { %v1986_v43 = vpop.f32.mrb[11].mxu0  ;;  %1031 = vmax.xlane.f32.xlu0 %v1030_v41 }
 0x5f6   : > { %v769_v44 = vpop.f32.mrb[16].mxu1 }
 0x5f7   : > { %v1018_v45 = vsel %vm1010_vm10, %v769_v44, -1e+30  ;;  %v1979_v46 = vpop.f32.mrb[17].mxu1 }
 0x5f8   : > { %v772_v47 = vpop.f32.mrb[18].mxu1  ;;  %v1033_v49 = vsel %vm1023_vm6, %v1018_v45, -inf }
 0x5f9   : > { %1037 = vmax.xlane.f32.xlu0 %v1036_v48  ;;  %1034 = vmax.xlane.f32.xlu1 %v1033_v49  ;;  %v1980_v50 = vpop.f32.mrb[19].mxu1 }
 0x5fa   : > { %v943_v51 = vpop.f32.mrb[12].mxu0 }
 0x5fb   : > { %v1021_v52 = vsel %vm1013_vm11, %v943_v51, -1e+30  ;;  %v1997_v53 = vpop.f32.mrb[13].mxu0 }
 0x5fc   : > { %v946_v54 = vpop.f32.mrb[14].mxu0  ;;  %v1042_v55 = vsel %vm1023_vm6, %v1021_v52, -inf }
 0x5fd   : > { %v1998_v56 = vpop.f32.mrb[15].mxu0  ;;  %1043 = vmax.xlane.f32.xlu0 %v1042_v55 }
 0x5fe   : > { %v885_v57 = vpop.f32.mrb[20].mxu1 }
 0x5ff   : > { %v1020_v58 = vsel %vm1012_vm12, %v885_v57, -1e+30  ;;  %v1991_v59 = vpop.f32.mrb[21].mxu1 }
 0x600   : > { %v888_v60 = vpop.f32.mrb[22].mxu1  ;;  %v1039_v61 = vsel %vm1023_vm6, %v1020_v58, -inf }
 0x601   : > { %1040 = vmax.xlane.f32.xlu1 %v1039_v61  ;;  %v1992_v62 = vpop.f32.mrb[23].mxu1 }
 0x606   : > { %v1001_v63 = vpop.f32.mrb[24].mxu1 }
 0x607   : > { %v1022_v13 = vsel %vm1014_vm13, %v1001_v63, -1e+30  ;;  %v2003_v15 = vpop.f32.mrb[25].mxu1 }
 0x608   : > { %v1004_v16 = vpop.f32.mrb[26].mxu1  ;;  %v1045_v18 = vsel %vm1023_vm6, %v1022_v13, -inf }
 0x609   : > { %1046 = vmax.xlane.f32.xlu1 %v1045_v18  ;;  %v2004_v21 = vpop.f32.mrb[27].mxu1  ;;  %v2150_v18 = vld [vmem:[#allocation14] sm:$0xff]  }
 0x60a   : > { %2006 = vmatpush3.bf16.msra.mxu0 %v2150_v18  ;;  %v2157_v18 = vld [vmem:[#allocation14 + $0x38] sm:$0xff]  }
 0x60b   : > { %2017 = vmatprep.subr.bf16.mxu0 %v2606_v17 }
 0x676   : > { %v1026_v23 = vpop.xlane.xlu1 %1025 }
 0x677   : > { %v1048_v24 = vsub.f32 %v3028_v22, %v1026_v23 }
 0x679   : > { %v1056_v25 = vmul.f32 1.442695, %v1048_v24 }
 0x67b   : > { %2170 = vpow2.f32 %v1056_v25  ;;  %v2151_v25 = vld [vmem:[#allocation14 + $0x8] sm:$0xff]  }
 0x67c   : > { %2012 = vmatpush3.bf16.msra.mxu1 %v2151_v25 }
 0x67d   : > { %2023 = vmatprep.subr.bf16.mxu1 %v2606_v17 }
 0x67e   : > { %v1029_v26 = vpop.xlane.xlu0 %1028 }
 0x67f   : > { %v1049_v27 = vsub.f32 %v1016_v32, %v1029_v26 }
 0x681   : > { %v1058_v28 = vmul.f32 1.442695, %v1049_v27 }
 0x682   : > { %v1032_v29 = vpop.xlane.xlu0 %1031 }
 0x683   : > { %2172 = vpow2.f32 %v1058_v28  ;;  %v1050_v30 = vsub.f32 %v1017_v36, %v1032_v29 }
 0x685   : > { %v2171_v31 = vpop.eup %2170  ;;  %v1060_v33 = vmul.f32 1.442695, %v1050_v30 }
 0x686   : > { %v1038_v34 = vpop.xlane.xlu0 %1037  ;;  %v1035_v35 = vpop.xlane.xlu1 %1034  ;;  %v3048_v37 = vmul.f32 %v2171_v31, %v2902_v3 }
 0x687   : > { %2174 = vpow2.f32 %v1060_v33  ;;  %v1052_v38 = vsub.f32 %v1019_v42, %v1038_v34  ;;  %v1051_v39 = vsub.f32 %v1018_v45, %v1035_v35  ;;  %v2152_v35 = vld [vmem:[#allocation14 + $0x10] sm:$0xff]  }
 0x688   : > { %v1080_v22 = vsel %vm1023_vm6, %v3048_v37, 0.0 }
 0x689   : > { %v1064_v40 = vmul.f32 1.442695, %v1052_v38  ;;  %v1062_v41 = vmul.f32 1.442695, %v1051_v39  ;;  %1081 = vadd.xlane.f32.xlu0 %v1080_v22 }
 0x68a   : > { %v1044_v32 = vpop.xlane.xlu0 %1043 }
 0x68b   : > { %2176 = vpow2.f32 %v1064_v40  ;;  %v1054_v43 = vsub.f32 %v1021_v52, %v1044_v32 }
 0x68c   : > { %2178 = vpow2.f32 %v1062_v41 }
 0x68d   : > { %v2173_v36 = vpop.eup %2172  ;;  %v1068_v44 = vmul.f32 1.442695, %v1054_v43 }
 0x68e   : > { %v1041_v46 = vpop.xlane.xlu1 %1040  ;;  %v3053_v47 = vmul.f32 %v2173_v36, %v2904_v4  ;;  %v2153_v36 = vld [vmem:[#allocation14 + $0x18] sm:$0xff]  }
 0x68f   : > { %2180 = vpow2.f32 %v1068_v44  ;;  %v1053_v48 = vsub.f32 %v1020_v58, %v1041_v46 }
 0x690   : > { %v1083_v42 = vsel %vm1023_vm6, %v3053_v47, 0.0 }
 0x691   : > { %v2175_v45 = vpop.eup %2174  ;;  %v1066_v49 = vmul.f32 1.442695, %v1053_v48  ;;  %1084 = vadd.xlane.f32.xlu1 %v1083_v42 }
 0x692   : > { %v3058_v50 = vmul.f32 %v2175_v45, %v2906_v5 }
 0x693   : > { %2182 = vpow2.f32 %v1066_v49  ;;  %v2154_v49 = vld [vmem:[#allocation14 + $0x20] sm:$0xff]  }
 0x694   : > { %v1086_v51 = vsel %vm1023_vm6, %v3058_v50, 0.0 }
 0x695   : > { %v2177_v52 = vpop.eup %2176  ;;  %1087 = vadd.xlane.f32.xlu0 %v1086_v51 }
 0x696   : > { %v2179_v53 = vpop.eup %2178  ;;  %v1047_v54 = vpop.xlane.xlu1 %1046  ;;  %v3063_v55 = vmul.f32 %v2177_v52, %v2910_v7 }
 0x697   : > { %v1055_v56 = vsub.f32 %v1022_v13, %v1047_v54  ;;  %v3066_v57 = vmul.f32 %v2179_v53, %v2908_v6 }
 0x698   : > { %v1092_v58 = vsel %vm1023_vm6, %v3063_v55, 0.0 }
 0x699   : > { %v2181_v59 = vpop.eup %2180  ;;  %v1070_v60 = vmul.f32 1.442695, %v1055_v56  ;;  %1093 = vadd.xlane.f32.xlu0 %v1092_v58  ;;  %v1089_v61 = vsel %vm1023_vm6, %v3066_v57, 0.0  ;;  %v2155_v56 = vld [vmem:[#allocation14 + $0x28] sm:$0xff]  }
 0x69a   : > { %1090 = vadd.xlane.f32.xlu1 %v1089_v61  ;;  %v3073_v62 = vmul.f32 %v2181_v59, %v2914_v9 }
 0x69b   : > { %2184 = vpow2.f32 %v1070_v60  ;;  %v2156_v60 = vld [vmem:[#allocation14 + $0x30] sm:$0xff]  }
 0x69c   : > { %v1098_v63 = vsel %vm1023_vm6, %v3073_v62, 0.0 }
 0x69d   : > { %v2183_v13 = vpop.eup %2182  ;;  %1099 = vadd.xlane.f32.xlu0 %v1098_v63 }
 0x69e   : > { %v3078_v15 = vmul.f32 %v2183_v13, %v2912_v8 }
 0x6a0   : > { %v1095_v16 = vsel %vm1023_vm6, %v3078_v15, 0.0 }
 0x6a1   : > { %1096 = vadd.xlane.f32.xlu1 %v1095_v16 }
 0x6a5   : > { %v2185_v21 = vpop.eup %2184 }
 0x6a6   : > { %v3083_v23 = vmul.f32 %v2185_v21, %v2916_v10  ;;  %v2158_v21 = vld [vmem:[#allocation17] sm:$0xff]  }
 0x6a8   : > { %v1101_v24 = vsel %vm1023_vm6, %v3083_v23, 0.0 }
 0x6a9   : > { %1102 = vadd.xlane.f32.xlu1 %v1101_v24 }
 0x6b3   : > { %1548 = vrot.lane.b32.xlu0 %v2980_v20, %s2608_s16 }
 0x716   : > { %v1082_v26 = vpop.xlane.xlu0 %1081 }
 0x717   : > { %v1104_v27 = vmax.f32 %v1082_v26, 1e-30 }
 0x719   : > { %2186 = vrcp.f32 %v1104_v27 }
 0x71e   : > { %v1085_v28 = vpop.xlane.xlu1 %1084 }
 0x71f   : > { %v1105_v29 = vmax.f32 %v1085_v28, 1e-30  ;;  %v2161_v28 = vld [vmem:[#allocation20 + $0x8] sm:$0xff]  }
 0x721   : > { %2188 = vrcp.f32 %v1105_v29 }
 0x722   : > { %v1088_v30 = vpop.xlane.xlu0 %1087 }
 0x723   : > { %v2187_v31 = vpop.eup %2186  ;;  %v1106_v33 = vmax.f32 %v1088_v30, 1e-30 }
 0x724   : > { %v1120_v34 = vmul.f32 %v2187_v31, %v3048_v37 }
 0x725   : > { %2190 = vrcp.f32 %v1106_v33 }
 0x726   : > { %v1094_v38 = vpop.xlane.xlu0 %1093  ;;  %v1128_v39 = vpack.c.bf16 %v1120_v34, %v1120_v34 }
 0x727   : > { %v1108_v22 = vmax.f32 %v1094_v38, 1e-30  ;;  %v1091_v40 = vpop.xlane.xlu1 %1090 }
 0x728   : > { %v1107_v41 = vmax.f32 %v1091_v40, 1e-30  ;;  %2008 = vmatmul.mubr.msk.bf16.vlgmr.msra.gmra.mrb[16].mxu0 %vm424_vm4, %v1128_v39 }
 0x729   : > { %2192 = vrcp.f32 %v1108_v22  ;;  %2018 = vmatpush3.bf16.msra.mxu0 %v2152_v35  ;;  %2019 = vmatprep.mubr.msk.bf16.mxu0 %vm2607_vm0, %v2606_v17 }
 0x72a   : > { %2194 = vrcp.f32 %v1107_v41  ;;  %v1100_v20 = vpop.xlane.xlu0 %1099  ;;  %2029 = vmatprep.subr.bf16.mxu0 %v2606_v17 }
 0x72b   : > { %v2189_v32 = vpop.eup %2188  ;;  %v1110_v43 = vmax.f32 %v1100_v20, 1e-30 }
 0x72c   : > { %v1121_v37 = vmul.f32 %v2189_v32, %v3053_v47 }
 0x72d   : > { %2196 = vrcp.f32 %v1110_v43 }
 0x72e   : > { %v1097_v44 = vpop.xlane.xlu1 %1096  ;;  %v1129_v46 = vpack.c.bf16 %v1121_v37, %v1121_v37  ;;  %v1549_v27 = vpop.permute.xlu0 %1548 }
 0x72f   : > { %v2191_v48 = vpop.eup %2190  ;;  %v1109_v42 = vmax.f32 %v1097_v44, 1e-30 }
 0x730   : > { %v1122_v45 = vmul.f32 %v2191_v48, %v3058_v50  ;;  %2014 = vmatmul.mubr.msk.bf16.vlgmr.msra.gmra.mrb[28].mxu1 %vm424_vm4, %v1129_v46 }
 0x731   : > { %2198 = vrcp.f32 %v1109_v42  ;;  %2024 = vmatpush3.bf16.msra.mxu1 %v2153_v36  ;;  %2025 = vmatprep.mubr.msk.bf16.mxu1 %vm2607_vm0, %v2606_v17 }
 0x732   : > { %v1130_v51 = vpack.c.bf16 %v1122_v45, %v1122_v45  ;;  %2035 = vmatprep.subr.bf16.mxu1 %v2606_v17 }
 0x733   : > { %v2193_v47 = vpop.eup %2192 }
 0x734   : > { %v2195_v52 = vpop.eup %2194  ;;  %2020 = vmatmul.mubr.msk.bf16.vlgmr.msra.gmra.mrb[20].mxu0 %vm424_vm4, %v1130_v51  ;;  %v1124_v50 = vmul.f32 %v2193_v47, %v3063_v55 }
 0x735   : > { %v1123_v53 = vmul.f32 %v2195_v52, %v3066_v57  ;;  %2030 = vmatpush3.bf16.msra.mxu0 %v2154_v49  ;;  %2031 = vmatprep.mubr.msk.bf16.mxu0 %vm2607_vm0, %v2606_v17 }
 0x736   : > { %v1103_v54 = vpop.xlane.xlu1 %1102  ;;  %2041 = vmatprep.subr.bf16.mxu0 %v2606_v17  ;;  %v1132_v63 = vpack.c.bf16 %v1124_v50, %v1124_v50 }
 0x737   : > { %v1111_v58 = vmax.f32 %v1103_v54, 1e-30  ;;  %v1131_v59 = vpack.c.bf16 %v1123_v53, %v1123_v53  ;;  %v2197_v61 = vpop.eup %2196 }
 0x738   : > { %v1126_v13 = vmul.f32 %v2197_v61, %v3073_v62  ;;  %v2159_v62 = vld [vmem:[#allocation17 + $0x8] sm:$0xff]  }
 0x739   : > { %2200 = vrcp.f32 %v1111_v58  ;;  %2026 = vmatmul.mubr.msk.bf16.vlgmr.msra.gmra.mrb[32].mxu1 %vm424_vm4, %v1131_v59 }
 0x73a   : > { %2036 = vmatpush3.bf16.msra.mxu1 %v2155_v56  ;;  %2037 = vmatprep.mubr.msk.bf16.mxu1 %vm2607_vm0, %v2606_v17  ;;  %v1134_v24 = vpack.c.bf16 %v1126_v13, %v1126_v13 }
 0x73b   : > { %v2199_v57 = vpop.eup %2198  ;;  %2047 = vmatprep.subr.bf16.mxu1 %v2606_v17 }
 0x73c   : > { %v1125_v55 = vmul.f32 %v2199_v57, %v3078_v15  ;;  %2032 = vmatmul.mubr.msk.bf16.vlgmr.msra.gmra.mrb[24].mxu0 %vm424_vm4, %v1132_v63 }
 0x73d   : > { %2042 = vmatpush3.bf16.msra.mxu0 %v2156_v60  ;;  %2043 = vmatprep.mubr.msk.bf16.mxu0 %vm2607_vm0, %v2606_v17 }
 0x73e   : > { %v1133_v16 = vpack.c.bf16 %v1125_v55, %v1125_v55  ;;  %2053 = vmatprep.subr.bf16.mxu0 %v2606_v17 }
 0x741   : > { %2038 = vmatmul.mubr.msk.bf16.vlgmr.msra.gmra.mrb[36].mxu1 %vm424_vm4, %v1133_v16 }
 0x742   : > { %2048 = vmatpush3.bf16.msra.mxu1 %v2157_v18  ;;  %2049 = vmatprep.mubr.msk.bf16.mxu1 %vm2607_vm0, %v2606_v17 }
 0x743   : > { %v2201_v15 = vpop.eup %2200  ;;  %2061 = vmatprep.subr.bf16.mxu1 %v2606_v17 }
 0x744   : > { %v1127_v25 = vmul.f32 %v2201_v15, %v3083_v23  ;;  %2044 = vmatmul.mubr.msk.bf16.vlgmr.msra.gmra.mrb[28].mxu0 %vm424_vm4, %v1134_v24  ;;  %v2160_v23 = vld [vmem:[#allocation20] sm:$0xff]  }
 0x745   : > { %2054 = vmatpush3.bf16.msra.mxu0 %v2158_v21  ;;  %2057 = vmatprep.mubr.msk.bf16.mxu0 %vm2607_vm0, %v2606_v17 }
 0x746   : > { %2055 = vmatprep.subr.bf16.mxu0 %v2606_v17  ;;  %v1135_v26 = vpack.c.bf16 %v1127_v25, %v1127_v25 }
 0x749   : > { %2050 = vmatmul.mubr.msk.bf16.vlgmr.msra.gmra.mrb[40].mxu1 %vm424_vm4, %v1135_v26  ;;  %2056 = vmatpush3.bf16.msra.mxu0 %v2159_v62  ;;  %vm1586_vm4 = vcmask 1046534  }
 0x74a   : > { %2065 = vmatprep.mubr.msk.bf16.mxu1 %vm2607_vm0, %v2606_v17  ;;  %2062 = vmatpush3.bf16.msra.mxu1 %v2160_v23  ;;  %vm1577_vm0 = vcmask 1043459  }
 0x74b   : > { %2063 = vmatprep.subr.bf16.mxu1 %v2606_v17 }
 0x74c   : > { %2058 = vmatmul.mubr.msk.bf16.vlgmr.msra.gmra.mrb[32].mxu0 %vm374_vm3, %v1549_v27 }
 0x74e   : > { %2064 = vmatpush3.bf16.msra.mxu1 %v2161_v28 }
 0x7fb   : > { %v1195_v29 = vpop.f32.mrb[16].mxu0 }
 0x7fc   : > { %v2009_v30 = vpop.f32.mrb[17].mxu0 }
 0x7fd   : > { %v1198_v31 = vpop.f32.mrb[18].mxu0 }
 0x7fe   : > { %v2010_v33 = vpop.f32.mrb[19].mxu0 }
 0x803   : > { %v1244_v34 = vpop.f32.mrb[28].mxu1 }
 0x804   : > { %v1570_v35 = vrot.slane %v1244_v34, 7  ;;  %v2015_v38 = vpop.f32.mrb[29].mxu1 }
 0x805   : > { %v1247_v39 = vpop.f32.mrb[30].mxu1 }
 0x806   : > { %v1572_v22 = vsel %vm1571_vm14, %v1570_v35, %v1195_v29  ;;  %v2016_v40 = vpop.f32.mrb[31].mxu1 }
 0x807   : > { %v1293_v41 = vpop.f32.mrb[20].mxu0 }
 0x808   : > { %v1573_v20 = vrot.slane %v1293_v41, 6  ;;  %v2021_v32 = vpop.f32.mrb[21].mxu0 }
 0x809   : > { %v1296_v37 = vpop.f32.mrb[22].mxu0 }
 0x80a   : > { %v1575_v43 = vsel %vm1574_vm15, %v1573_v20, %v1572_v22  ;;  %v2022_v17 = vpop.f32.mrb[23].mxu0 }
 0x80c   : > { %v1342_v36 = vpop.f32.mrb[32].mxu1 }
 0x80d   : > { %v1576_v44 = vrot.slane %v1342_v36, 5  ;;  %v2027_v46 = vpop.f32.mrb[33].mxu1  ;;  %v1736_v36 = vld [vmem:[%s1735_s19] sm:$0xff] }
 0x80e   : > { %v1345_v48 = vpop.f32.mrb[34].mxu1 }
 0x80f   : > { %v1578_v42 = vsel %vm1577_vm0, %v1576_v44, %v1575_v43  ;;  %v2028_v45 = vpop.f32.mrb[35].mxu1  ;;  %v1391_v49 = vpop.f32.mrb[24].mxu0 }
 0x810   : > { %v1579_v51 = vrot.slane %v1391_v49, 4  ;;  %v2033_v47 = vpop.f32.mrb[25].mxu0 }
 0x811   : > { %v1394_v52 = vpop.f32.mrb[26].mxu0 }
 0x812   : > { %v1581_v53 = vsel %vm1580_vm1, %v1579_v51, %v1578_v42  ;;  %v2034_v50 = vpop.f32.mrb[27].mxu0 }
 0x814   : > { %v1440_v54 = vpop.f32.mrb[36].mxu1 }
 0x815   : > { %v1582_v56 = vrot.slane %v1440_v54, 3  ;;  %v2039_v58 = vpop.f32.mrb[37].mxu1 }
 0x816   : > { %v1443_v59 = vpop.f32.mrb[38].mxu1 }
 0x817   : > { %v1584_v60 = vsel %vm1583_vm2, %v1582_v56, %v1581_v53  ;;  %v2040_v61 = vpop.f32.mrb[39].mxu1  ;;  %v1489_v63 = vpop.f32.mrb[28].mxu0 }
 0x818   : > { %v1585_v57 = vrot.slane %v1489_v63, 2  ;;  %v2045_v55 = vpop.f32.mrb[29].mxu0 }
 0x819   : > { %v1492_v13 = vpop.f32.mrb[30].mxu0 }
 0x81a   : > { %v2046_v16 = vpop.f32.mrb[31].mxu0  ;;  %v1587_v18 = vsel %vm1586_vm4, %v1585_v57, %v1584_v60 }
 0x81c   : > { %v1538_v21 = vpop.f32.mrb[40].mxu1 }
 0x81d   : > { %v1588_v24 = vrot.slane %v1538_v21, 1  ;;  %v2051_v15 = vpop.f32.mrb[41].mxu1 }
 0x81e   : > { %v1541_v25 = vpop.f32.mrb[42].mxu1  ;;  %v3206_v15 = vmov %v2976_v19 }
 0x81f   : > { %v2052_v62 = vpop.f32.mrb[43].mxu1  ;;  %v1590_v26 = vsel %vm1589_vm5, %v1588_v24, %v1587_v18  ;;  %v1629_v27 = vpop.f32.mrb[32].mxu0 }
 0x820   : > { %v1630_v23 = vadd.f32 %v1629_v27, %v1590_v26  ;;  %v2059_v28 = vpop.f32.mrb[33].mxu0 }
 0x821   : > { %v1632_v29 = vpop.f32.mrb[34].mxu0 }
 0x822   : > { %v1641_v30 = vadd.f32 %v2918_v11, %v1630_v23  ;;  %v2060_v31 = vpop.f32.mrb[35].mxu0 }
 0x824   : > { %v1642_v33 = vpack.c.bf16 %v1641_v30, %v1641_v30 }
 0x826   : > { %2066 = vmatmul.mubr.msk.bf16.vlgmr.msra.gmra.mrb[44].mxu1 %vm374_vm3, %v1642_v33 }
 0x8f9   : > { %v1702_v34 = vpop.f32.mrb[44].mxu1 }
 0x8fa   : > { %v1703_v35 = vadd.f32 %v2920_v12, %v1702_v34  ;;  %v2067_v38 = vpop.f32.mrb[45].mxu1 }
 0x8fb   : > { %v1705_v39 = vpop.f32.mrb[46].mxu1 }
 0x8fc   : > { %1708 = vmax.xlane.f32.xlu1 %v1703_v35  ;;  %v2068_v22 = vpop.f32.mrb[47].mxu1 }
 0x989   : > { %v1709_v40 = vpop.xlane.xlu1 %1708 }
 0x98a   : > { %v1726_v41 = vsub.f32 %v1703_v35, %v1709_v40  ;;  %vm1710_vm6 = vcmp.ge.f32.partialorder %v1703_v35, %v1709_v40 }
 0x98b   : > { %v1711_v20 = vsel %vm1710_vm6, %v2898_v1, 128 }
 0x98c   : > { %v1727_v32 = vmul.f32 1.442695, %v1726_v41  ;;  %v1713_v37 = vshra.s32 %v1711_v20, 16  ;;  %v1712_v44 = vand.u32 65535, %v1711_v20 }
 0x98e   : > { %2202 = vpow2.f32 %v1727_v32  ;;  %v1715_v43 = vcvt.s32.f32 %v1713_v37  ;;  %v1714_v48 = vcvt.s32.f32 %v1712_v44 }
 0x990   : > { %1716 = vmin.xlane.f32.xlu1 %v1715_v43 }
 0x998   : > { %v2203_v17 = vpop.eup %2202 }
 0x999   : > { %1729 = vadd.xlane.f32.xlu0 %v2203_v17 }
 0x9a1   : > { %1738 = vperm.xlu1 %2130, %v1736_v36  }
 0xa1d   : > { %v1717_v46 = vpop.xlane.xlu1 %1716 }
 0xa1e   : > { %vm1718_vm3 = vcmp.eq.f32.partialorder %v1715_v43, %v1717_v46  ;;  %v1723_v52 = vcvt.f32.s32 %v1717_v46 }
 0xa1f   : > { %v1719_v42 = vsel %vm1718_vm3, %v1714_v48, inf }
 0xa20   : > { %1720 = vmin.xlane.f32.xlu1 %v1719_v42  ;;  %v1724_v54 = vshll.u32 %v1723_v52, 16 }
 0xa21   : > { %v1739_v45 = vpop.permute.xlu1 %1738 }
 0xa22   : > { %vm1740_vm7 = vcmp.eq.s32.totalorder %v2898_v1, %v1739_v45 }
 0xa23   : > { %v1741_v49 = vsel %vm1740_vm7, %v1703_v35, 0.0 }
 0xa24   : > { %1742 = vadd.xlane.f32.xlu0 %v1741_v49 }
 0xa26   : > { %v1730_v51 = vpop.xlane.xlu0 %1729 }
 0xa27   : > { %2204 = vlog2.f32 %v1730_v51 }
 0xa31   : > { %v2205_v47 = vpop.eup %2204 }
 0xa32   : > { %v1732_v53 = vmul.f32 0.6931472, %v2205_v47 }
 0xa34   : > { %v1733_v58 = vadd.f32 %v1732_v53, %v1709_v40 }
 0xaad   : > { %v1721_v50 = vpop.xlane.xlu1 %1720 }
 0xaae   : > { %v1722_v56 = vcvt.f32.s32 %v1721_v50  ;;  %235 = sbr.rel (!%p233_p6) target bundleno = 239 (0xef), region = 142 }
 0xab0   : > { %v1725_v13 = vadd.s32 %v1724_v54, %v1722_v56  }
 0xab1   : > { %v1743_v59 = vpop.xlane.xlu0 %1742 }
 0xab2   : > { %1747 = vst.msk [vmem:[%s1745_s0] sm:$0xff] %vm1746_vm8, %v1725_v13  ;;  %v1744_v60 = vsub.f32 %v1733_v58, %v1743_v59 }
 0xab4   : > { %1749 = vst.msk [vmem:[%s1748_s17] sm:$0xff] %vm1746_vm8, %v1744_v60 }
 0xab5   :  { %2503 = shalt.err (!%p2500_p11)
}
 0xab6   :  { %s2504_s30 = scalar_lea.hbm %s3204_s13, 896 }
 0xab7   :  { %p2505_p12 = scmp.ne.s32.totalorder %s3204_s13, %s2504_s30  ;;  %p2508_p13 = scmp.lt.u32.totalorder %s2504_s30, %s3204_s13 }
 0xab9   :  { %p2510_p0 = pnand %p2508_p13, %p2505_p12 }
 0xabb   :  { %2513 = shalt.err (!%p2510_p0)
}
 0xabc   :  { %1761 = dma.vmem_to_hbm [thread:$0]  %s1756_s20, 896, %s3204_s13, [#allocation4], %s2587_s23, %s2587_s23, %s2588_s24  }
 0xabd   :  { %s2514_s3 = scalar_lea.vmem %s3154_s25, 896  ;;  %p2519_p2 = scmp.lt.s32.totalorder %s3154_s25, %s3154_s25 }
 0xabe   :  { %p2515_p1 = scmp.ne.s32.totalorder %s3154_s25, %s2514_s3  ;;  %p2520_p3 = scmp.lt.s32.totalorder %s2514_s3, %s2514_s3 }
 0xac0   :  { %p2521_p4 = por %p2520_p3, %p2519_p2 }
 0xac2   :  { %p2522_p5 = pnand %p2521_p4, %p2515_p1 }
 0xac4   :  { %2525 = shalt.err (!%p2522_p5)
}
 0xac5   :  { %s2526_s21 = scalar_lea.hbm %s3205_s14, 896 }
 0xac6   :  { %p2527_p6 = scmp.ne.s32.totalorder %s3205_s14, %s2526_s21  ;;  %p2530_p7 = scmp.lt.u32.totalorder %s2526_s21, %s3205_s14 }
 0xac8   :  { %p2532_p8 = pnand %p2530_p7, %p2527_p6 }
 0xaca   :  { %2535 = shalt.err (!%p2532_p8)
}
 0xacb   :  { %1773 = dma.vmem_to_hbm [thread:$0]  %s3154_s25, 896, %s3205_s14, [#allocation25], %s2587_s23, %s2587_s23, %s2588_s24  }
 0xacc   :  { %2566 = dma.done.wait [#allocation4], 896  }
 0xacd   :  { %2567 = vsyncadd [#allocation4], 4294966400 }
 0xace   :  { %2568 = dma.done.wait [#allocation25], 896  }
 0xacf   :  { %2569 = vsyncadd [#allocation25], 4294966400 }
 0xad0   :  { %1780 = vsyncpa [#allocation3], 1 }
 0xad1   :  { %1781 = vsyncpa [#allocation6], 1 }
 0xad2   :  { %1782 = vsyncpa [#allocation9], 1 }
 0xad3   :  { %1783 = vsyncpa [#allocation12], 1 }
 0xad4   :  { %1784 = vsyncpa [#allocation15], 1 }
 0xad5   :  { %1785 = vsyncpa [#allocation18], 1 }
 0xad6   :  { %1786 = vsyncpa [#allocation21], 1 }
 0xad7   :  { %1787 = vsyncpa [#allocation4], 1 }
 0xad8   :  { %1788 = vsyncpa [#allocation25], 1 }

</bundles_post_ra>
